<compile_context>
chip_gen: v7x
topology: tpu7x:2x2x1
jax: 0.10.0
libtpu: 0.0.40
codegen_flags: <defaults>
</compile_context>

<pallas_src>
import functools
import math

import jax
import jax.numpy as jnp
from jax import lax
from jax.experimental import pallas as pl
from jax.experimental.pallas import tpu as pltpu


# ---------------------------------------------------------------------------
# small helpers (plain JAX, outside kernels)
# ---------------------------------------------------------------------------
def timestep_sinusoidal(t, dim):
    half = dim // 2
    freqs = jnp.exp(-math.log(10000.0) * jnp.arange(half, dtype=jnp.float32) / half)
    args = t.astype(jnp.float32)[:, None] * freqs[None, :]
    return jnp.concatenate([jnp.cos(args), jnp.sin(args)], axis=-1)


def init_params(key, C, time_dim, embed_dim, hidden, cond_dim):
    keys = jax.random.split(key, 14)

    def w(k, shape, scale=0.05):
        return (scale * jax.random.normal(k, shape)).astype(jnp.float32)

    return {
        # timestep encoder MLP
        "t_w1": w(keys[0], (time_dim, embed_dim)), "t_b1": jnp.zeros((1, embed_dim), jnp.float32),
        "t_w2": w(keys[1], (embed_dim, embed_dim)), "t_b2": jnp.zeros((1, embed_dim), jnp.float32),
        # conditional projections
        "res_cond_proj": {
            "clip_image": (w(keys[2], (cond_dim, embed_dim)), jnp.zeros((1, embed_dim), jnp.float32)),
            "clip_text":  (w(keys[3], (cond_dim, embed_dim)), jnp.zeros((1, embed_dim), jnp.float32)),
        },
        "attn_cond_proj": {
            "clip_image": (w(keys[4], (cond_dim, hidden)), jnp.zeros((1, hidden), jnp.float32)),
            "clip_text":  (w(keys[5], (cond_dim, hidden)), jnp.zeros((1, hidden), jnp.float32)),
        },
        # unet stand-in
        "emb_w": w(keys[6], (embed_dim, hidden)), "emb_b": jnp.zeros((1, hidden), jnp.float32),
        "conv_in_w": w(keys[7], (9, C, hidden)), "conv_in_b": jnp.zeros((1, hidden), jnp.float32),
        "wq": w(keys[8], (hidden, hidden)),
        "wk": w(keys[9], (hidden, hidden)),
        "wv": w(keys[10], (hidden, hidden)),
        "wo": w(keys[11], (hidden, hidden)),
        "conv_out_w": w(keys[12], (9, hidden, 2 * C)), "conv_out_b": jnp.zeros((1, 2 * C), jnp.float32),
    }


# ---------------------------------------------------------------------------
# Fused ADM kernel: conditioning chain + conv_in + cross-attn + conv_out.
# Layout: channels on sublanes, flattened H*W on lanes (lane-dense everywhere).
# Grid: one step per `batch_tile` batch elements; all weights are full blocks.
# ---------------------------------------------------------------------------
def _adm_kernel(*refs, n_cond, res_idx, attn_idx, W):
    it = iter(refs)
    x_ref = next(it)                                    # (bt, C, N)      f32
    ts_ref = next(it)                                   # (time_dim, B)   f32
    ci_refs = [next(it) for _ in range(n_cond)]         # each (cond, B)  f32
    tw1 = next(it); tb1 = next(it)                      # (embed, time_dim), (embed, 1)
    tw2 = next(it); tb2 = next(it)                      # (embed, embed),    (embed, 1)
    res_w = [(next(it), next(it)) for _ in range(len(res_idx))]
    embw = next(it); embb = next(it)                    # (D, embed), (D, 1)
    attn_w = [(next(it), next(it)) for _ in range(len(attn_idx))]
    a_k = next(it); a_v = next(it)                      # (D, D) f32 (scale folded into a_k)
    cinw = next(it); cinb = next(it)                    # (D, 9C) bf16, (D, 1) f32
    coutw = next(it); coutb = next(it)                  # (2C, 9D) bf16, (2C, 1) f32
    out_ref = next(it)                                  # (bt, 2C, N) f32
    taps_ref = next(it)                                 # (9D, N) bf16 scratch

    f32, bf16 = jnp.float32, jnp.bfloat16
    bt, C, N = x_ref.shape
    D = cinw.shape[0]
    B = ts_ref.shape[1]
    n_attn = len(attn_idx)

    def silu(v):
        return v * jax.nn.sigmoid(v)

    def mm(a, b):
        return jnp.dot(a, b, preferred_element_type=f32)

    # ---- conditioning chain: tiny full-batch column-major matmuls (dim, B) -
    # recomputed per grid step (a handful of 32x32 @ 32xB matmuls) -> no extra
    # kernel launch, no HBM round trip, no in-kernel transposes.
    t1 = silu(mm(tw1[...], ts_ref[...]) + tb1[...])
    t_emb = mm(tw2[...], t1) + tb2[...]
    res_cond = t_emb
    for (w_, b_), ci in zip(res_w, res_idx):
        res_cond = res_cond + mm(w_[...], ci_refs[ci][...]) + b_[...]
    emb_all = silu(mm(embw[...], res_cond) + embb[...])           # (D, B)
    ktil_all, vtil_all = [], []
    for (w_, b_), ci in zip(attn_w, attn_idx):
        tok = mm(w_[...], ci_refs[ci][...]) + b_[...]             # (D, B)
        ktil_all.append(mm(a_k[...], tok))                        # scores weights
        vtil_all.append(mm(a_v[...], tok))                        # output weights

    # ---- masks / constants shared by both convs ----------------------------
    col = lax.broadcasted_iota(jnp.int32, (1, N), 1)
    col = (col & (W - 1)) if (W & (W - 1)) == 0 else (col % W)
    mask_l = col != 0              # left  neighbour invalid at x == 0
    mask_r = col != (W - 1)        # right neighbour invalid at x == W-1
    lane_b = lax.broadcasted_iota(jnp.int32, (1, B), 1)
    var_rows = lax.broadcasted_iota(jnp.int32, (2 * C, 1), 0) >= C
    halo_c = jnp.zeros((C, W + 1), bf16)
    halo_d = jnp.zeros((D, W + 1), bf16)

    def taps9(x_bf, halo):
        # 9 shifted/masked im2col taps from a zero-padded row-major value.
        padded = jnp.concatenate([halo, x_bf, halo], axis=1)      # (Cin, N+2W+2)
        taps = []
        for t in range(9):
            dy, dx = t // 3 - 1, t % 3 - 1
            start = (W + 1) + dy * W + dx
            tap = padded[:, start:start + N]
            if dx == -1:
                tap = jnp.where(mask_l, tap, 0.0)
            elif dx == 1:
                tap = jnp.where(mask_r, tap, 0.0)
            taps.append(tap)
        return taps

    cinw_v = cinw[...]; cinb_v = cinb[...]
    coutw_v = coutw[...]; coutb_v = coutb[...]
    b0 = pl.program_id(0)

    for j in range(bt):                    # unrolled: bt batch elements per step
        gb = b0 * bt + j
        sel = lane_b == gb

        def pick(m):                       # (D, B) -> (D, 1) column for element gb
            return jnp.sum(jnp.where(sel, m, 0.0), axis=1, keepdims=True)

        # ---- conv_in: register-resident bf16 taps -> ONE MXU matmul --------
        taps_in = jnp.concatenate(taps9(x_ref[j].astype(bf16), halo_c), axis=0)
        h = mm(cinw_v, taps_in) + cinb_v                          # (D, N) f32
        h = silu(h + pick(emb_all))

        # ---- cross attention over S conditioning tokens (VPU/EUP only) -----
        if n_attn > 0:
            scores = [jnp.sum(pick(ktil_all[s]) * h, axis=0, keepdims=True)
                      for s in range(n_attn)]                     # S x (1, N)
            m = scores[0]
            for s_ in scores[1:]:
                m = jnp.maximum(m, s_)
            ps = [jnp.exp(s_ - m) for s_ in scores]
            denom = ps[0]
            for p_ in ps[1:]:
                denom = denom + p_
            inv = pl.reciprocal(denom, approx=True)
            o = None
            for s in range(n_attn):
                term = pick(vtil_all[s]) * (ps[s] * inv)          # (D,1)*(1,N) FMA
                o = term if o is None else o + term
            h = h + o

        # ---- conv_out: bf16 im2col scratch -> ONE MXU matmul ---------------
        th = taps9(h.astype(bf16), halo_d)
        for t in range(9):
            taps_ref[t * D:(t + 1) * D, :] = th[t]                # 16-aligned rows
        y = mm(coutw_v, taps_ref[...]) + coutb_v                  # (2C, N) f32
        # lower half = variance value: (v + 1) / 2 applied in-register so the
        # whole (2C, N) tile is one lane-dense, sublane-aligned store.
        out_ref[j] = jnp.where(var_rows, (y + 1.0) * 0.5, y)


# ---------------------------------------------------------------------------
# Forward wrapper: a single pallas_call over grid=(B // batch_tile,).
# ---------------------------------------------------------------------------
def adm_forward(params, x_nchw, timestep, conditional_inputs, time_dim, batch_tile=1):
    B, C, H, W = x_nchw.shape
    assert H >= 2 and W >= 2, "3x3 conv halo logic assumes at least a 2x2 image"
    assert B % batch_tile == 0, "batch_tile must divide the batch size"
    N = H * W
    hidden = params["conv_in_w"].shape[-1]
    conditional_inputs = conditional_inputs or {}
    hp = lax.Precision.HIGHEST
    bf16 = jnp.bfloat16

    # canonical order = insertion order of conditional_inputs (pinned by caller).
    # Keys present in neither projection dict are silently ignored (as before).
    cond_keys = list(conditional_inputs)
    res_keys = [k for k in cond_keys if k in params["res_cond_proj"]]
    attn_keys = [k for k in cond_keys if k in params["attn_cond_proj"]]
    res_idx = tuple(cond_keys.index(k) for k in res_keys)
    attn_idx = tuple(cond_keys.index(k) for k in attn_keys)

    t_sin_t = timestep_sinusoidal(timestep, time_dim).T           # (time_dim, B)
    x_flat = x_nchw.reshape(B, C, N)                              # NCHW kept as-is

    # Hoist Wq / Wo onto the conditioning tokens (deletes the two (D,D)x(D,N)
    # attention matmuls in-kernel); the 1/sqrt(D) score scale is folded into a_k.
    a_k = jnp.dot(params["wq"], params["wk"].T, precision=hp) / math.sqrt(hidden)
    a_v = jnp.dot(params["wv"], params["wo"], precision=hp).T

    # conv kernels packed to (Cout, 9*Cin), tap-major / channel-minor, pre-cast bf16
    cinw = jnp.transpose(params["conv_in_w"], (2, 0, 1)).reshape(hidden, 9 * C).astype(bf16)
    cinb = params["conv_in_b"].reshape(hidden, 1)
    coutw = jnp.transpose(params["conv_out_w"], (2, 0, 1)).reshape(2 * C, 9 * hidden).astype(bf16)
    coutb = params["conv_out_b"].reshape(2 * C, 1)

    inputs, specs = [], []

    def add_full(a):
        inputs.append(a)
        specs.append(pl.BlockSpec(a.shape, lambda b, _n=a.ndim: (0,) * _n))

    def add_batched(a):
        inputs.append(a)
        specs.append(pl.BlockSpec((batch_tile,) + a.shape[1:], lambda b: (b, 0, 0)))

    add_batched(x_flat)
    add_full(t_sin_t)
    for k in cond_keys:
        add_full(conditional_inputs[k].T)                         # (cond_dim, B)
    add_full(params["t_w1"].T); add_full(params["t_b1"].T)
    add_full(params["t_w2"].T); add_full(params["t_b2"].T)
    for k in res_keys:
        w_, b_ = params["res_cond_proj"][k]
        add_full(w_.T); add_full(b_.T)
    add_full(params["emb_w"].T); add_full(params["emb_b"].T)
    for k in attn_keys:
        w_, b_ = params["attn_cond_proj"][k]
        add_full(w_.T); add_full(b_.T)
    add_full(a_k); add_full(a_v)
    add_full(cinw); add_full(cinb)
    add_full(coutw); add_full(coutb)

    out = pl.pallas_call(
        functools.partial(_adm_kernel, n_cond=len(cond_keys),
                          res_idx=res_idx, attn_idx=attn_idx, W=W),
        grid=(B // batch_tile,),
        in_specs=specs,
        out_specs=pl.BlockSpec((batch_tile, 2 * C, N), lambda b: (b, 0, 0)),
        out_shape=jax.ShapeDtypeStruct((B, 2 * C, N), jnp.float32),
        scratch_shapes=[pltpu.VMEM((9 * hidden, N), jnp.bfloat16)],  # conv_out im2col
        compiler_params=pltpu.CompilerParams(
            dimension_semantics=("parallel",),      # v7x: batch steps over both TCs
        ),
    )(*inputs)

    pred = out[:, :C, :].reshape(B, C, H, W)
    var = out[:, C:, :].reshape(B, C, H, W)
    return {"prediction": pred, "variance_value": var}


# ---------------------------------------------------------------------------
# Pure-JAX reference (XLA) mirroring the module math, for self-checking.
# ---------------------------------------------------------------------------
def adm_forward_reference(params, x, timestep, conditional_inputs, time_dim):
    hp = lax.Precision.HIGHEST
    conditional_inputs = conditional_inputs or {}

    def lin(v, w, b, act=None):
        y = jnp.dot(v, w, precision=hp) + b
        return y * jax.nn.sigmoid(y) if act == "silu" else y

    t_sin = timestep_sinusoidal(timestep, time_dim)
    t_emb = lin(lin(t_sin, params["t_w1"], params["t_b1"], "silu"),
                params["t_w2"], params["t_b2"])
    res_cond = t_emb
    for key_ in conditional_inputs:
        if key_ in params["res_cond_proj"]:
            w_, b_ = params["res_cond_proj"][key_]
            res_cond = res_cond + lin(conditional_inputs[key_], w_, b_)
    tokens = []
    for key_ in conditional_inputs:
        if key_ in params["attn_cond_proj"]:
            w_, b_ = params["attn_cond_proj"][key_]
            tokens.append(lin(conditional_inputs[key_], w_, b_)[:, None, :])
    emb = lin(res_cond, params["emb_w"], params["emb_b"], "silu")

    def conv3x3(z, w9, b):
        cin, cout = w9.shape[1], w9.shape[2]
        w = w9.reshape(3, 3, cin, cout)
        y = lax.conv_general_dilated(z, w, (1, 1), "SAME",
                                     dimension_numbers=("NCHW", "HWIO", "NCHW"),
                                     precision=hp)
        return y + b.reshape(1, cout, 1, 1)

    h = conv3x3(x, params["conv_in_w"], params["conv_in_b"])
    h = h + emb[:, :, None, None]
    h = h * jax.nn.sigmoid(h)
    B, D, H, W = h.shape
    if tokens:
        ctx = jnp.concatenate(tokens, axis=1)                       # (B, S, D)
        htok = h.reshape(B, D, H * W).transpose(0, 2, 1)            # (B, N, D)
        q = jnp.einsum("bnd,de->bne", htok, params["wq"], precision=hp)
        k = jnp.einsum("bsd,de->bse", ctx, params["wk"], precision=hp)
        v = jnp.einsum("bsd,de->bse", ctx, params["wv"], precision=hp)
        s = jnp.einsum("bne,bse->bns", q, k, precision=hp) / math.sqrt(D)
        p = jax.nn.softmax(s, axis=-1)
        o = jnp.einsum("bns,bse->bne", p, v, precision=hp)
        o = jnp.einsum("bne,ef->bnf", o, params["wo"], precision=hp)
        htok = htok + o
        h = htok.transpose(0, 2, 1).reshape(B, D, H, W)
    y = conv3x3(h, params["conv_out_w"], params["conv_out_b"])
    c = y.shape[1] // 2
    return {"prediction": y[:, :c], "variance_value": (y[:, c:] + 1.0) * 0.5}


# ---------------------------------------------------------------------------
if __name__ == "__main__":
    B, C, H, W = 2, 4, 16, 16
    time_dim = 32
    embed_dim = 32
    hidden = 32
    cond_dim = 32

    key = jax.random.PRNGKey(0)
    kp, kx, kc1, kc2 = jax.random.split(key, 4)

    params = init_params(kp, C, time_dim, embed_dim, hidden, cond_dim)

    x = jax.random.normal(kx, (B, C, H, W), jnp.float32)
    timestep = jnp.array([3, 17], dtype=jnp.int32)
    conditional_inputs = {
        "clip_image": jax.random.normal(kc1, (B, cond_dim), jnp.float32),
        "clip_text": jax.random.normal(kc2, (B, cond_dim), jnp.float32),
    }

    # batch_tile=1 keeps grid=(2,) so both v7x TensorCores get work; on single-TC
    # v5e/v6e, batch_tile=2 merges the batch into one step to amortize overhead.
    fwd = jax.jit(functools.partial(adm_forward, time_dim=time_dim, batch_tile=1))
    out = fwd(params, x, timestep, conditional_inputs)
    jax.block_until_ready(out)

    assert out["prediction"].shape == (B, C, H, W)
    assert out["variance_value"].shape == (B, C, H, W)
    assert bool(jnp.isfinite(out["prediction"]).all())
    assert bool(jnp.isfinite(out["variance_value"]).all())

    # correctness check vs pure-JAX reference (loose tolerance: bf16 MXU convs
    # and approx reciprocal in the softmax denominator)
    ref = adm_forward_reference(params, x, timestep, conditional_inputs, time_dim)
    max_pred = float(jnp.max(jnp.abs(out["prediction"] - ref["prediction"])))
    max_var = float(jnp.max(jnp.abs(out["variance_value"] - ref["variance_value"])))
    assert max_pred < 8e-2 and max_var < 8e-2, (max_pred, max_var)

    print("KERNEL_OK")
</pallas_src>

<mosaic_0001>
module attributes {stable_mosaic.version = 11 : i64} {
  func.func @_adm_kernel(%arg0: i32, %arg1: memref<1x4x256xf32, #tpu.memory_space<vmem>>, %arg2: memref<32x2xf32, #tpu.memory_space<vmem>>, %arg3: memref<32x2xf32, #tpu.memory_space<vmem>>, %arg4: memref<32x2xf32, #tpu.memory_space<vmem>>, %arg5: memref<32x32xf32, #tpu.memory_space<vmem>>, %arg6: memref<32x1xf32, #tpu.memory_space<vmem>>, %arg7: memref<32x32xf32, #tpu.memory_space<vmem>>, %arg8: memref<32x1xf32, #tpu.memory_space<vmem>>, %arg9: memref<32x32xf32, #tpu.memory_space<vmem>>, %arg10: memref<32x1xf32, #tpu.memory_space<vmem>>, %arg11: memref<32x32xf32, #tpu.memory_space<vmem>>, %arg12: memref<32x1xf32, #tpu.memory_space<vmem>>, %arg13: memref<32x32xf32, #tpu.memory_space<vmem>>, %arg14: memref<32x1xf32, #tpu.memory_space<vmem>>, %arg15: memref<32x32xf32, #tpu.memory_space<vmem>>, %arg16: memref<32x1xf32, #tpu.memory_space<vmem>>, %arg17: memref<32x32xf32, #tpu.memory_space<vmem>>, %arg18: memref<32x1xf32, #tpu.memory_space<vmem>>, %arg19: memref<32x32xf32, #tpu.memory_space<vmem>>, %arg20: memref<32x32xf32, #tpu.memory_space<vmem>>, %arg21: memref<32x36xbf16, #tpu.memory_space<vmem>>, %arg22: memref<32x1xf32, #tpu.memory_space<vmem>>, %arg23: memref<8x288xbf16, #tpu.memory_space<vmem>>, %arg24: memref<8x1xf32, #tpu.memory_space<vmem>>, %arg25: memref<1x8x256xf32, #tpu.memory_space<vmem>>, %arg26: memref<288x256xbf16, #tpu.memory_space<vmem>>) attributes {dimension_semantics = [#tpu.dimension_semantics<parallel>], iteration_bounds = array<i64: 2>, scalar_prefetch = 0 : i64, scratch_operands = 1 : i64, tpu.core_type = #tpu.core_type<tc>, window_params = [{transform_indices = @transform_0, window_bounds = array<i64: 1, 4, 256>}, {pipeline_mode = #tpu.pipeline_mode<synchronous>, transform_indices = @transform_1, window_bounds = array<i64: 32, 2>}, {pipeline_mode = #tpu.pipeline_mode<synchronous>, transform_indices = @transform_2, window_bounds = array<i64: 32, 2>}, {pipeline_mode = #tpu.pipeline_mode<synchronous>, transform_indices = @transform_3, window_bounds = array<i64: 32, 2>}, {pipeline_mode = #tpu.pipeline_mode<synchronous>, transform_indices = @transform_4, window_bounds = array<i64: 32, 32>}, {pipeline_mode = #tpu.pipeline_mode<synchronous>, transform_indices = @transform_5, window_bounds = array<i64: 32, 1>}, {pipeline_mode = #tpu.pipeline_mode<synchronous>, transform_indices = @transform_6, window_bounds = array<i64: 32, 32>}, {pipeline_mode = #tpu.pipeline_mode<synchronous>, transform_indices = @transform_7, window_bounds = array<i64: 32, 1>}, {pipeline_mode = #tpu.pipeline_mode<synchronous>, transform_indices = @transform_8, window_bounds = array<i64: 32, 32>}, {pipeline_mode = #tpu.pipeline_mode<synchronous>, transform_indices = @transform_9, window_bounds = array<i64: 32, 1>}, {pipeline_mode = #tpu.pipeline_mode<synchronous>, transform_indices = @transform_10, window_bounds = array<i64: 32, 32>}, {pipeline_mode = #tpu.pipeline_mode<synchronous>, transform_indices = @transform_11, window_bounds = array<i64: 32, 1>}, {pipeline_mode = #tpu.pipeline_mode<synchronous>, transform_indices = @transform_12, window_bounds = array<i64: 32, 32>}, {pipeline_mode = #tpu.pipeline_mode<synchronous>, transform_indices = @transform_13, window_bounds = array<i64: 32, 1>}, {pipeline_mode = #tpu.pipeline_mode<synchronous>, transform_indices = @transform_14, window_bounds = array<i64: 32, 32>}, {pipeline_mode = #tpu.pipeline_mode<synchronous>, transform_indices = @transform_15, window_bounds = array<i64: 32, 1>}, {pipeline_mode = #tpu.pipeline_mode<synchronous>, transform_indices = @transform_16, window_bounds = array<i64: 32, 32>}, {pipeline_mode = #tpu.pipeline_mode<synchronous>, transform_indices = @transform_17, window_bounds = array<i64: 32, 1>}, {pipeline_mode = #tpu.pipeline_mode<synchronous>, transform_indices = @transform_18, window_bounds = array<i64: 32, 32>}, {pipeline_mode = #tpu.pipeline_mode<synchronous>, transform_indices = @transform_19, window_bounds = array<i64: 32, 32>}, {pipeline_mode = #tpu.pipeline_mode<synchronous>, transform_indices = @transform_20, window_bounds = array<i64: 32, 36>}, {pipeline_mode = #tpu.pipeline_mode<synchronous>, transform_indices = @transform_21, window_bounds = array<i64: 32, 1>}, {pipeline_mode = #tpu.pipeline_mode<synchronous>, transform_indices = @transform_22, window_bounds = array<i64: 8, 288>}, {pipeline_mode = #tpu.pipeline_mode<synchronous>, transform_indices = @transform_23, window_bounds = array<i64: 8, 1>}, {transform_indices = @transform_24, window_bounds = array<i64: 1, 8, 256>}]} {
    %c0 = arith.constant 0 : index
    %c0_0 = arith.constant 0 : index
    %0 = vector.load %arg5[%c0, %c0_0] : memref<32x32xf32, #tpu.memory_space<vmem>>, vector<32x32xf32>
    %c0_1 = arith.constant 0 : index
    %c0_2 = arith.constant 0 : index
    %1 = vector.load %arg2[%c0_1, %c0_2] : memref<32x2xf32, #tpu.memory_space<vmem>>, vector<32x2xf32>
    %cst = arith.constant dense<0.000000e+00> : vector<32x2xf32>
    %2 = tpu.matmul %0, %1, %cst {dimension_numbers = #tpu.dot_dimension_numbers<[1], [0], [0], [1], [0, 0, 1, 1], [], []>} : vector<32x32xf32>, vector<32x2xf32>, vector<32x2xf32> -> vector<32x2xf32>
    %c0_3 = arith.constant 0 : index
    %c0_4 = arith.constant 0 : index
    %3 = vector.load %arg6[%c0_3, %c0_4] : memref<32x1xf32, #tpu.memory_space<vmem>>, vector<32x1xf32>
    %4 = vector.broadcast %3 : vector<32x1xf32> to vector<32x2xf32>
    %5 = arith.addf %2, %4 : vector<32x2xf32>
    %6 = arith.negf %5 : vector<32x2xf32>
    %7 = math.exp %6 : vector<32x2xf32>
    %cst_5 = arith.constant 1.000000e+00 : f32
    %8 = vector.broadcast %cst_5 : f32 to vector<32x2xf32>
    %9 = arith.addf %8, %7 : vector<32x2xf32>
    %10 = arith.divf %8, %9 : vector<32x2xf32>
    %11 = arith.mulf %5, %10 : vector<32x2xf32>
    %c0_6 = arith.constant 0 : index
    %c0_7 = arith.constant 0 : index
    %12 = vector.load %arg7[%c0_6, %c0_7] : memref<32x32xf32, #tpu.memory_space<vmem>>, vector<32x32xf32>
    %cst_8 = arith.constant dense<0.000000e+00> : vector<32x2xf32>
    %13 = tpu.matmul %12, %11, %cst_8 {dimension_numbers = #tpu.dot_dimension_numbers<[1], [0], [0], [1], [0, 0, 1, 1], [], []>} : vector<32x32xf32>, vector<32x2xf32>, vector<32x2xf32> -> vector<32x2xf32>
    %c0_9 = arith.constant 0 : index
    %c0_10 = arith.constant 0 : index
    %14 = vector.load %arg8[%c0_9, %c0_10] : memref<32x1xf32, #tpu.memory_space<vmem>>, vector<32x1xf32>
    %15 = vector.broadcast %14 : vector<32x1xf32> to vector<32x2xf32>
    %16 = arith.addf %13, %15 : vector<32x2xf32>
    %c0_11 = arith.constant 0 : index
    %c0_12 = arith.constant 0 : index
    %17 = vector.load %arg9[%c0_11, %c0_12] : memref<32x32xf32, #tpu.memory_space<vmem>>, vector<32x32xf32>
    %c0_13 = arith.constant 0 : index
    %c0_14 = arith.constant 0 : index
    %18 = vector.load %arg3[%c0_13, %c0_14] : memref<32x2xf32, #tpu.memory_space<vmem>>, vector<32x2xf32>
    %cst_15 = arith.constant dense<0.000000e+00> : vector<32x2xf32>
    %19 = tpu.matmul %17, %18, %cst_15 {dimension_numbers = #tpu.dot_dimension_numbers<[1], [0], [0], [1], [0, 0, 1, 1], [], []>} : vector<32x32xf32>, vector<32x2xf32>, vector<32x2xf32> -> vector<32x2xf32>
    %20 = arith.addf %16, %19 : vector<32x2xf32>
    %c0_16 = arith.constant 0 : index
    %c0_17 = arith.constant 0 : index
    %21 = vector.load %arg10[%c0_16, %c0_17] : memref<32x1xf32, #tpu.memory_space<vmem>>, vector<32x1xf32>
    %22 = vector.broadcast %21 : vector<32x1xf32> to vector<32x2xf32>
    %23 = arith.addf %20, %22 : vector<32x2xf32>
    %c0_18 = arith.constant 0 : index
    %c0_19 = arith.constant 0 : index
    %24 = vector.load %arg11[%c0_18, %c0_19] : memref<32x32xf32, #tpu.memory_space<vmem>>, vector<32x32xf32>
    %c0_20 = arith.constant 0 : index
    %c0_21 = arith.constant 0 : index
    %25 = vector.load %arg4[%c0_20, %c0_21] : memref<32x2xf32, #tpu.memory_space<vmem>>, vector<32x2xf32>
    %cst_22 = arith.constant dense<0.000000e+00> : vector<32x2xf32>
    %26 = tpu.matmul %24, %25, %cst_22 {dimension_numbers = #tpu.dot_dimension_numbers<[1], [0], [0], [1], [0, 0, 1, 1], [], []>} : vector<32x32xf32>, vector<32x2xf32>, vector<32x2xf32> -> vector<32x2xf32>
    %27 = arith.addf %23, %26 : vector<32x2xf32>
    %c0_23 = arith.constant 0 : index
    %c0_24 = arith.constant 0 : index
    %28 = vector.load %arg12[%c0_23, %c0_24] : memref<32x1xf32, #tpu.memory_space<vmem>>, vector<32x1xf32>
    %29 = vector.broadcast %28 : vector<32x1xf32> to vector<32x2xf32>
    %30 = arith.addf %27, %29 : vector<32x2xf32>
    %c0_25 = arith.constant 0 : index
    %c0_26 = arith.constant 0 : index
    %31 = vector.load %arg13[%c0_25, %c0_26] : memref<32x32xf32, #tpu.memory_space<vmem>>, vector<32x32xf32>
    %cst_27 = arith.constant dense<0.000000e+00> : vector<32x2xf32>
    %32 = tpu.matmul %31, %30, %cst_27 {dimension_numbers = #tpu.dot_dimension_numbers<[1], [0], [0], [1], [0, 0, 1, 1], [], []>} : vector<32x32xf32>, vector<32x2xf32>, vector<32x2xf32> -> vector<32x2xf32>
    %c0_28 = arith.constant 0 : index
    %c0_29 = arith.constant 0 : index
    %33 = vector.load %arg14[%c0_28, %c0_29] : memref<32x1xf32, #tpu.memory_space<vmem>>, vector<32x1xf32>
    %34 = vector.broadcast %33 : vector<32x1xf32> to vector<32x2xf32>
    %35 = arith.addf %32, %34 : vector<32x2xf32>
    %36 = arith.negf %35 : vector<32x2xf32>
    %37 = math.exp %36 : vector<32x2xf32>
    %cst_30 = arith.constant 1.000000e+00 : f32
    %38 = vector.broadcast %cst_30 : f32 to vector<32x2xf32>
    %39 = arith.addf %38, %37 : vector<32x2xf32>
    %40 = arith.divf %38, %39 : vector<32x2xf32>
    %41 = arith.mulf %35, %40 : vector<32x2xf32>
    %c0_31 = arith.constant 0 : index
    %c0_32 = arith.constant 0 : index
    %42 = vector.load %arg15[%c0_31, %c0_32] : memref<32x32xf32, #tpu.memory_space<vmem>>, vector<32x32xf32>
    %c0_33 = arith.constant 0 : index
    %c0_34 = arith.constant 0 : index
    %43 = vector.load %arg3[%c0_33, %c0_34] : memref<32x2xf32, #tpu.memory_space<vmem>>, vector<32x2xf32>
    %cst_35 = arith.constant dense<0.000000e+00> : vector<32x2xf32>
    %44 = tpu.matmul %42, %43, %cst_35 {dimension_numbers = #tpu.dot_dimension_numbers<[1], [0], [0], [1], [0, 0, 1, 1], [], []>} : vector<32x32xf32>, vector<32x2xf32>, vector<32x2xf32> -> vector<32x2xf32>
    %c0_36 = arith.constant 0 : index
    %c0_37 = arith.constant 0 : index
    %45 = vector.load %arg16[%c0_36, %c0_37] : memref<32x1xf32, #tpu.memory_space<vmem>>, vector<32x1xf32>
    %46 = vector.broadcast %45 : vector<32x1xf32> to vector<32x2xf32>
    %47 = arith.addf %44, %46 : vector<32x2xf32>
    %c0_38 = arith.constant 0 : index
    %c0_39 = arith.constant 0 : index
    %48 = vector.load %arg19[%c0_38, %c0_39] : memref<32x32xf32, #tpu.memory_space<vmem>>, vector<32x32xf32>
    %cst_40 = arith.constant dense<0.000000e+00> : vector<32x2xf32>
    %49 = tpu.matmul %48, %47, %cst_40 {dimension_numbers = #tpu.dot_dimension_numbers<[1], [0], [0], [1], [0, 0, 1, 1], [], []>} : vector<32x32xf32>, vector<32x2xf32>, vector<32x2xf32> -> vector<32x2xf32>
    %c0_41 = arith.constant 0 : index
    %c0_42 = arith.constant 0 : index
    %50 = vector.load %arg20[%c0_41, %c0_42] : memref<32x32xf32, #tpu.memory_space<vmem>>, vector<32x32xf32>
    %cst_43 = arith.constant dense<0.000000e+00> : vector<32x2xf32>
    %51 = tpu.matmul %50, %47, %cst_43 {dimension_numbers = #tpu.dot_dimension_numbers<[1], [0], [0], [1], [0, 0, 1, 1], [], []>} : vector<32x32xf32>, vector<32x2xf32>, vector<32x2xf32> -> vector<32x2xf32>
    %c0_44 = arith.constant 0 : index
    %c0_45 = arith.constant 0 : index
    %52 = vector.load %arg17[%c0_44, %c0_45] : memref<32x32xf32, #tpu.memory_space<vmem>>, vector<32x32xf32>
    %c0_46 = arith.constant 0 : index
    %c0_47 = arith.constant 0 : index
    %53 = vector.load %arg4[%c0_46, %c0_47] : memref<32x2xf32, #tpu.memory_space<vmem>>, vector<32x2xf32>
    %cst_48 = arith.constant dense<0.000000e+00> : vector<32x2xf32>
    %54 = tpu.matmul %52, %53, %cst_48 {dimension_numbers = #tpu.dot_dimension_numbers<[1], [0], [0], [1], [0, 0, 1, 1], [], []>} : vector<32x32xf32>, vector<32x2xf32>, vector<32x2xf32> -> vector<32x2xf32>
    %c0_49 = arith.constant 0 : index
    %c0_50 = arith.constant 0 : index
    %55 = vector.load %arg18[%c0_49, %c0_50] : memref<32x1xf32, #tpu.memory_space<vmem>>, vector<32x1xf32>
    %56 = vector.broadcast %55 : vector<32x1xf32> to vector<32x2xf32>
    %57 = arith.addf %54, %56 : vector<32x2xf32>
    %c0_51 = arith.constant 0 : index
    %c0_52 = arith.constant 0 : index
    %58 = vector.load %arg19[%c0_51, %c0_52] : memref<32x32xf32, #tpu.memory_space<vmem>>, vector<32x32xf32>
    %cst_53 = arith.constant dense<0.000000e+00> : vector<32x2xf32>
    %59 = tpu.matmul %58, %57, %cst_53 {dimension_numbers = #tpu.dot_dimension_numbers<[1], [0], [0], [1], [0, 0, 1, 1], [], []>} : vector<32x32xf32>, vector<32x2xf32>, vector<32x2xf32> -> vector<32x2xf32>
    %c0_54 = arith.constant 0 : index
    %c0_55 = arith.constant 0 : index
    %60 = vector.load %arg20[%c0_54, %c0_55] : memref<32x32xf32, #tpu.memory_space<vmem>>, vector<32x32xf32>
    %cst_56 = arith.constant dense<0.000000e+00> : vector<32x2xf32>
    %61 = tpu.matmul %60, %57, %cst_56 {dimension_numbers = #tpu.dot_dimension_numbers<[1], [0], [0], [1], [0, 0, 1, 1], [], []>} : vector<32x32xf32>, vector<32x2xf32>, vector<32x2xf32> -> vector<32x2xf32>
    %62 = tpu.iota {dimensions = array<i32: 1>} : vector<1x256xi32>
    %c15_i32 = arith.constant 15 : i32
    %63 = vector.broadcast %c15_i32 : i32 to vector<1x256xi32>
    %64 = arith.andi %62, %63 : vector<1x256xi32>
    %c0_i32 = arith.constant 0 : i32
    %65 = vector.broadcast %c0_i32 : i32 to vector<1x256xi32>
    %66 = arith.cmpi ne, %64, %65 : vector<1x256xi32>
    %c15_i32_57 = arith.constant 15 : i32
    %67 = vector.broadcast %c15_i32_57 : i32 to vector<1x256xi32>
    %68 = arith.cmpi ne, %64, %67 : vector<1x256xi32>
    %69 = tpu.iota {dimensions = array<i32: 1>} : vector<1x2xi32>
    %70 = tpu.iota {dimensions = array<i32: 0>} : vector<8x1xi32>
    %c4_i32 = arith.constant 4 : i32
    %71 = vector.broadcast %c4_i32 : i32 to vector<8x1xi32>
    %72 = arith.cmpi sge, %70, %71 : vector<8x1xi32>
    %cst_58 = arith.constant 0.000000e+00 : bf16
    %73 = vector.broadcast %cst_58 : bf16 to vector<4x17xbf16>
    %cst_59 = arith.constant 0.000000e+00 : bf16
    %74 = vector.broadcast %cst_59 : bf16 to vector<32x17xbf16>
    %c0_60 = arith.constant 0 : index
    %c0_61 = arith.constant 0 : index
    %75 = vector.load %arg21[%c0_60, %c0_61] : memref<32x36xbf16, #tpu.memory_space<vmem>>, vector<32x36xbf16>
    %c0_62 = arith.constant 0 : index
    %c0_63 = arith.constant 0 : index
    %76 = vector.load %arg22[%c0_62, %c0_63] : memref<32x1xf32, #tpu.memory_space<vmem>>, vector<32x1xf32>
    %c0_64 = arith.constant 0 : index
    %c0_65 = arith.constant 0 : index
    %77 = vector.load %arg23[%c0_64, %c0_65] : memref<8x288xbf16, #tpu.memory_space<vmem>>, vector<8x288xbf16>
    %c0_66 = arith.constant 0 : index
    %c0_67 = arith.constant 0 : index
    %78 = vector.load %arg24[%c0_66, %c0_67] : memref<8x1xf32, #tpu.memory_space<vmem>>, vector<8x1xf32>
    %c1_i32 = arith.constant 1 : i32
    %79 = arith.muli %arg0, %c1_i32 : i32
    %c0_i32_68 = arith.constant 0 : i32
    %80 = arith.addi %79, %c0_i32_68 : i32
    %81 = vector.broadcast %80 : i32 to vector<1x2xi32>
    %82 = arith.cmpi eq, %69, %81 : vector<1x2xi32>
    %c0_69 = arith.constant 0 : index
    %c0_70 = arith.constant 0 : index
    %c0_71 = arith.constant 0 : index
    %83 = vector.load %arg1[%c0_69, %c0_70, %c0_71] : memref<1x4x256xf32, #tpu.memory_space<vmem>>, vector<1x4x256xf32>
    %84 = vector.shape_cast %83 : vector<1x4x256xf32> to vector<4x256xf32>
    %85 = arith.truncf %84 : vector<4x256xf32> to vector<4x256xbf16>
    %86 = tpu.concatenate %73, %85, %73 in 1 : vector<4x17xbf16>, vector<4x256xbf16>, vector<4x17xbf16> -> vector<4x290xbf16>
    %87 = vector.extract_strided_slice %86 {offsets = [0, 0], sizes = [4, 256], strides = [1, 1]} : vector<4x290xbf16> to vector<4x256xbf16>
    %cst_72 = arith.constant 0.000000e+00 : f32
    %88 = arith.truncf %cst_72 : f32 to bf16
    %89 = vector.shape_cast %66 : vector<1x256xi1> to vector<1x256xi1>
    %90 = vector.broadcast %89 : vector<1x256xi1> to vector<4x256xi1>
    %91 = vector.broadcast %88 : bf16 to vector<4x256xbf16>
    %92 = arith.select %90, %87, %91 : vector<4x256xi1>, vector<4x256xbf16>
    %93 = vector.extract_strided_slice %86 {offsets = [0, 1], sizes = [4, 256], strides = [1, 1]} : vector<4x290xbf16> to vector<4x256xbf16>
    %94 = vector.extract_strided_slice %86 {offsets = [0, 2], sizes = [4, 256], strides = [1, 1]} : vector<4x290xbf16> to vector<4x256xbf16>
    %cst_73 = arith.constant 0.000000e+00 : f32
    %95 = arith.truncf %cst_73 : f32 to bf16
    %96 = vector.shape_cast %68 : vector<1x256xi1> to vector<1x256xi1>
    %97 = vector.broadcast %96 : vector<1x256xi1> to vector<4x256xi1>
    %98 = vector.broadcast %95 : bf16 to vector<4x256xbf16>
    %99 = arith.select %97, %94, %98 : vector<4x256xi1>, vector<4x256xbf16>
    %100 = vector.extract_strided_slice %86 {offsets = [0, 16], sizes = [4, 256], strides = [1, 1]} : vector<4x290xbf16> to vector<4x256xbf16>
    %cst_74 = arith.constant 0.000000e+00 : f32
    %101 = arith.truncf %cst_74 : f32 to bf16
    %102 = vector.shape_cast %66 : vector<1x256xi1> to vector<1x256xi1>
    %103 = vector.broadcast %102 : vector<1x256xi1> to vector<4x256xi1>
    %104 = vector.broadcast %101 : bf16 to vector<4x256xbf16>
    %105 = arith.select %103, %100, %104 : vector<4x256xi1>, vector<4x256xbf16>
    %106 = vector.extract_strided_slice %86 {offsets = [0, 17], sizes = [4, 256], strides = [1, 1]} : vector<4x290xbf16> to vector<4x256xbf16>
    %107 = vector.extract_strided_slice %86 {offsets = [0, 18], sizes = [4, 256], strides = [1, 1]} : vector<4x290xbf16> to vector<4x256xbf16>
    %cst_75 = arith.constant 0.000000e+00 : f32
    %108 = arith.truncf %cst_75 : f32 to bf16
    %109 = vector.shape_cast %68 : vector<1x256xi1> to vector<1x256xi1>
    %110 = vector.broadcast %109 : vector<1x256xi1> to vector<4x256xi1>
    %111 = vector.broadcast %108 : bf16 to vector<4x256xbf16>
    %112 = arith.select %110, %107, %111 : vector<4x256xi1>, vector<4x256xbf16>
    %113 = vector.extract_strided_slice %86 {offsets = [0, 32], sizes = [4, 256], strides = [1, 1]} : vector<4x290xbf16> to vector<4x256xbf16>
    %cst_76 = arith.constant 0.000000e+00 : f32
    %114 = arith.truncf %cst_76 : f32 to bf16
    %115 = vector.shape_cast %66 : vector<1x256xi1> to vector<1x256xi1>
    %116 = vector.broadcast %115 : vector<1x256xi1> to vector<4x256xi1>
    %117 = vector.broadcast %114 : bf16 to vector<4x256xbf16>
    %118 = arith.select %116, %113, %117 : vector<4x256xi1>, vector<4x256xbf16>
    %119 = vector.extract_strided_slice %86 {offsets = [0, 33], sizes = [4, 256], strides = [1, 1]} : vector<4x290xbf16> to vector<4x256xbf16>
    %120 = vector.extract_strided_slice %86 {offsets = [0, 34], sizes = [4, 256], strides = [1, 1]} : vector<4x290xbf16> to vector<4x256xbf16>
    %cst_77 = arith.constant 0.000000e+00 : f32
    %121 = arith.truncf %cst_77 : f32 to bf16
    %122 = vector.shape_cast %68 : vector<1x256xi1> to vector<1x256xi1>
    %123 = vector.broadcast %122 : vector<1x256xi1> to vector<4x256xi1>
    %124 = vector.broadcast %121 : bf16 to vector<4x256xbf16>
    %125 = arith.select %123, %120, %124 : vector<4x256xi1>, vector<4x256xbf16>
    %126 = tpu.concatenate %92, %93, %99, %105, %106, %112, %118, %119, %125 in 0 : vector<4x256xbf16>, vector<4x256xbf16>, vector<4x256xbf16>, vector<4x256xbf16>, vector<4x256xbf16>, vector<4x256xbf16>, vector<4x256xbf16>, vector<4x256xbf16>, vector<4x256xbf16> -> vector<36x256xbf16>
    %cst_78 = arith.constant dense<0.000000e+00> : vector<32x256xf32>
    %127 = tpu.matmul %75, %126, %cst_78 {dimension_numbers = #tpu.dot_dimension_numbers<[1], [0], [0], [1], [0, 0, 1, 1], [], []>} : vector<32x36xbf16>, vector<36x256xbf16>, vector<32x256xf32> -> vector<32x256xf32>
    %128 = vector.broadcast %76 : vector<32x1xf32> to vector<32x256xf32>
    %129 = arith.addf %127, %128 : vector<32x256xf32>
    %cst_79 = arith.constant 0.000000e+00 : f32
    %130 = vector.shape_cast %82 : vector<1x2xi1> to vector<1x2xi1>
    %131 = vector.broadcast %130 : vector<1x2xi1> to vector<32x2xi1>
    %132 = vector.broadcast %cst_79 : f32 to vector<32x2xf32>
    %133 = arith.select %131, %41, %132 : vector<32x2xi1>, vector<32x2xf32>
    %cst_80 = arith.constant dense<0.000000e+00> : vector<32xf32>
    %134 = vector.multi_reduction <add>, %133, %cst_80 [1] : vector<32x2xf32> to vector<32xf32>
    %135 = vector.shape_cast %134 : vector<32xf32> to vector<32x1xf32>
    %136 = vector.broadcast %135 : vector<32x1xf32> to vector<32x256xf32>
    %137 = arith.addf %129, %136 : vector<32x256xf32>
    %138 = arith.negf %137 : vector<32x256xf32>
    %139 = math.exp %138 : vector<32x256xf32>
    %cst_81 = arith.constant 1.000000e+00 : f32
    %140 = vector.broadcast %cst_81 : f32 to vector<32x256xf32>
    %141 = arith.addf %140, %139 : vector<32x256xf32>
    %142 = arith.divf %140, %141 : vector<32x256xf32>
    %143 = arith.mulf %137, %142 : vector<32x256xf32>
    %cst_82 = arith.constant 0.000000e+00 : f32
    %144 = vector.shape_cast %82 : vector<1x2xi1> to vector<1x2xi1>
    %145 = vector.broadcast %144 : vector<1x2xi1> to vector<32x2xi1>
    %146 = vector.broadcast %cst_82 : f32 to vector<32x2xf32>
    %147 = arith.select %145, %49, %146 : vector<32x2xi1>, vector<32x2xf32>
    %cst_83 = arith.constant dense<0.000000e+00> : vector<32xf32>
    %148 = vector.multi_reduction <add>, %147, %cst_83 [1] : vector<32x2xf32> to vector<32xf32>
    %149 = vector.shape_cast %148 : vector<32xf32> to vector<32x1xf32>
    %150 = vector.broadcast %149 : vector<32x1xf32> to vector<32x256xf32>
    %151 = arith.mulf %150, %143 : vector<32x256xf32>
    %cst_84 = arith.constant dense<0.000000e+00> : vector<256xf32>
    %152 = vector.multi_reduction <add>, %151, %cst_84 [0] : vector<32x256xf32> to vector<256xf32>
    %153 = vector.shape_cast %152 : vector<256xf32> to vector<1x256xf32>
    %cst_85 = arith.constant 0.000000e+00 : f32
    %154 = vector.shape_cast %82 : vector<1x2xi1> to vector<1x2xi1>
    %155 = vector.broadcast %154 : vector<1x2xi1> to vector<32x2xi1>
    %156 = vector.broadcast %cst_85 : f32 to vector<32x2xf32>
    %157 = arith.select %155, %59, %156 : vector<32x2xi1>, vector<32x2xf32>
    %cst_86 = arith.constant dense<0.000000e+00> : vector<32xf32>
    %158 = vector.multi_reduction <add>, %157, %cst_86 [1] : vector<32x2xf32> to vector<32xf32>
    %159 = vector.shape_cast %158 : vector<32xf32> to vector<32x1xf32>
    %160 = vector.broadcast %159 : vector<32x1xf32> to vector<32x256xf32>
    %161 = arith.mulf %160, %143 : vector<32x256xf32>
    %cst_87 = arith.constant dense<0.000000e+00> : vector<256xf32>
    %162 = vector.multi_reduction <add>, %161, %cst_87 [0] : vector<32x256xf32> to vector<256xf32>
    %163 = vector.shape_cast %162 : vector<256xf32> to vector<1x256xf32>
    %164 = arith.maximumf %153, %163 : vector<1x256xf32>
    %165 = arith.subf %153, %164 : vector<1x256xf32>
    %166 = math.exp %165 : vector<1x256xf32>
    %167 = arith.subf %163, %164 : vector<1x256xf32>
    %168 = math.exp %167 : vector<1x256xf32>
    %169 = arith.addf %166, %168 : vector<1x256xf32>
    %170 = tpu.reciprocal %169 {approx = true} : vector<1x256xf32> -> vector<1x256xf32>
    %cst_88 = arith.constant 0.000000e+00 : f32
    %171 = vector.shape_cast %82 : vector<1x2xi1> to vector<1x2xi1>
    %172 = vector.broadcast %171 : vector<1x2xi1> to vector<32x2xi1>
    %173 = vector.broadcast %cst_88 : f32 to vector<32x2xf32>
    %174 = arith.select %172, %51, %173 : vector<32x2xi1>, vector<32x2xf32>
    %cst_89 = arith.constant dense<0.000000e+00> : vector<32xf32>
    %175 = vector.multi_reduction <add>, %174, %cst_89 [1] : vector<32x2xf32> to vector<32xf32>
    %176 = vector.shape_cast %175 : vector<32xf32> to vector<32x1xf32>
    %177 = arith.mulf %166, %170 : vector<1x256xf32>
    %178 = vector.broadcast %176 : vector<32x1xf32> to vector<32x256xf32>
    %179 = vector.broadcast %177 : vector<1x256xf32> to vector<32x256xf32>
    %180 = arith.mulf %178, %179 : vector<32x256xf32>
    %cst_90 = arith.constant 0.000000e+00 : f32
    %181 = vector.shape_cast %82 : vector<1x2xi1> to vector<1x2xi1>
    %182 = vector.broadcast %181 : vector<1x2xi1> to vector<32x2xi1>
    %183 = vector.broadcast %cst_90 : f32 to vector<32x2xf32>
    %184 = arith.select %182, %61, %183 : vector<32x2xi1>, vector<32x2xf32>
    %cst_91 = arith.constant dense<0.000000e+00> : vector<32xf32>
    %185 = vector.multi_reduction <add>, %184, %cst_91 [1] : vector<32x2xf32> to vector<32xf32>
    %186 = vector.shape_cast %185 : vector<32xf32> to vector<32x1xf32>
    %187 = arith.mulf %168, %170 : vector<1x256xf32>
    %188 = vector.broadcast %186 : vector<32x1xf32> to vector<32x256xf32>
    %189 = vector.broadcast %187 : vector<1x256xf32> to vector<32x256xf32>
    %190 = arith.mulf %188, %189 : vector<32x256xf32>
    %191 = arith.addf %180, %190 : vector<32x256xf32>
    %192 = arith.addf %143, %191 : vector<32x256xf32>
    %193 = arith.truncf %192 : vector<32x256xf32> to vector<32x256xbf16>
    %194 = tpu.concatenate %74, %193, %74 in 1 : vector<32x17xbf16>, vector<32x256xbf16>, vector<32x17xbf16> -> vector<32x290xbf16>
    %195 = vector.extract_strided_slice %194 {offsets = [0, 0], sizes = [32, 256], strides = [1, 1]} : vector<32x290xbf16> to vector<32x256xbf16>
    %cst_92 = arith.constant 0.000000e+00 : f32
    %196 = arith.truncf %cst_92 : f32 to bf16
    %197 = vector.shape_cast %66 : vector<1x256xi1> to vector<1x256xi1>
    %198 = vector.broadcast %197 : vector<1x256xi1> to vector<32x256xi1>
    %199 = vector.broadcast %196 : bf16 to vector<32x256xbf16>
    %200 = arith.select %198, %195, %199 : vector<32x256xi1>, vector<32x256xbf16>
    %201 = vector.extract_strided_slice %194 {offsets = [0, 1], sizes = [32, 256], strides = [1, 1]} : vector<32x290xbf16> to vector<32x256xbf16>
    %202 = vector.extract_strided_slice %194 {offsets = [0, 2], sizes = [32, 256], strides = [1, 1]} : vector<32x290xbf16> to vector<32x256xbf16>
    %cst_93 = arith.constant 0.000000e+00 : f32
    %203 = arith.truncf %cst_93 : f32 to bf16
    %204 = vector.shape_cast %68 : vector<1x256xi1> to vector<1x256xi1>
    %205 = vector.broadcast %204 : vector<1x256xi1> to vector<32x256xi1>
    %206 = vector.broadcast %203 : bf16 to vector<32x256xbf16>
    %207 = arith.select %205, %202, %206 : vector<32x256xi1>, vector<32x256xbf16>
    %208 = vector.extract_strided_slice %194 {offsets = [0, 16], sizes = [32, 256], strides = [1, 1]} : vector<32x290xbf16> to vector<32x256xbf16>
    %cst_94 = arith.constant 0.000000e+00 : f32
    %209 = arith.truncf %cst_94 : f32 to bf16
    %210 = vector.shape_cast %66 : vector<1x256xi1> to vector<1x256xi1>
    %211 = vector.broadcast %210 : vector<1x256xi1> to vector<32x256xi1>
    %212 = vector.broadcast %209 : bf16 to vector<32x256xbf16>
    %213 = arith.select %211, %208, %212 : vector<32x256xi1>, vector<32x256xbf16>
    %214 = vector.extract_strided_slice %194 {offsets = [0, 17], sizes = [32, 256], strides = [1, 1]} : vector<32x290xbf16> to vector<32x256xbf16>
    %215 = vector.extract_strided_slice %194 {offsets = [0, 18], sizes = [32, 256], strides = [1, 1]} : vector<32x290xbf16> to vector<32x256xbf16>
    %cst_95 = arith.constant 0.000000e+00 : f32
    %216 = arith.truncf %cst_95 : f32 to bf16
    %217 = vector.shape_cast %68 : vector<1x256xi1> to vector<1x256xi1>
    %218 = vector.broadcast %217 : vector<1x256xi1> to vector<32x256xi1>
    %219 = vector.broadcast %216 : bf16 to vector<32x256xbf16>
    %220 = arith.select %218, %215, %219 : vector<32x256xi1>, vector<32x256xbf16>
    %221 = vector.extract_strided_slice %194 {offsets = [0, 32], sizes = [32, 256], strides = [1, 1]} : vector<32x290xbf16> to vector<32x256xbf16>
    %cst_96 = arith.constant 0.000000e+00 : f32
    %222 = arith.truncf %cst_96 : f32 to bf16
    %223 = vector.shape_cast %66 : vector<1x256xi1> to vector<1x256xi1>
    %224 = vector.broadcast %223 : vector<1x256xi1> to vector<32x256xi1>
    %225 = vector.broadcast %222 : bf16 to vector<32x256xbf16>
    %226 = arith.select %224, %221, %225 : vector<32x256xi1>, vector<32x256xbf16>
    %227 = vector.extract_strided_slice %194 {offsets = [0, 33], sizes = [32, 256], strides = [1, 1]} : vector<32x290xbf16> to vector<32x256xbf16>
    %228 = vector.extract_strided_slice %194 {offsets = [0, 34], sizes = [32, 256], strides = [1, 1]} : vector<32x290xbf16> to vector<32x256xbf16>
    %cst_97 = arith.constant 0.000000e+00 : f32
    %229 = arith.truncf %cst_97 : f32 to bf16
    %230 = vector.shape_cast %68 : vector<1x256xi1> to vector<1x256xi1>
    %231 = vector.broadcast %230 : vector<1x256xi1> to vector<32x256xi1>
    %232 = vector.broadcast %229 : bf16 to vector<32x256xbf16>
    %233 = arith.select %231, %228, %232 : vector<32x256xi1>, vector<32x256xbf16>
    %c0_98 = arith.constant 0 : index
    %c0_99 = arith.constant 0 : index
    %234 = vector.load %arg26[%c0_98, %c0_99] : memref<288x256xbf16, #tpu.memory_space<vmem>>, vector<32x256xbf16>
    tpu.vector_store %arg26[%c0_98, %c0_99], %200 {strides = array<i32>} : memref<288x256xbf16, #tpu.memory_space<vmem>>, vector<32x256xbf16>,
    %c32 = arith.constant 32 : index
    %c0_100 = arith.constant 0 : index
    %235 = vector.load %arg26[%c32, %c0_100] : memref<288x256xbf16, #tpu.memory_space<vmem>>, vector<32x256xbf16>
    tpu.vector_store %arg26[%c32, %c0_100], %201 {strides = array<i32>} : memref<288x256xbf16, #tpu.memory_space<vmem>>, vector<32x256xbf16>,
    %c64 = arith.constant 64 : index
    %c0_101 = arith.constant 0 : index
    %236 = vector.load %arg26[%c64, %c0_101] : memref<288x256xbf16, #tpu.memory_space<vmem>>, vector<32x256xbf16>
    tpu.vector_store %arg26[%c64, %c0_101], %207 {strides = array<i32>} : memref<288x256xbf16, #tpu.memory_space<vmem>>, vector<32x256xbf16>,
    %c96 = arith.constant 96 : index
    %c0_102 = arith.constant 0 : index
    %237 = vector.load %arg26[%c96, %c0_102] : memref<288x256xbf16, #tpu.memory_space<vmem>>, vector<32x256xbf16>
    tpu.vector_store %arg26[%c96, %c0_102], %213 {strides = array<i32>} : memref<288x256xbf16, #tpu.memory_space<vmem>>, vector<32x256xbf16>,
    %c128 = arith.constant 128 : index
    %c0_103 = arith.constant 0 : index
    %238 = vector.load %arg26[%c128, %c0_103] : memref<288x256xbf16, #tpu.memory_space<vmem>>, vector<32x256xbf16>
    tpu.vector_store %arg26[%c128, %c0_103], %214 {strides = array<i32>} : memref<288x256xbf16, #tpu.memory_space<vmem>>, vector<32x256xbf16>,
    %c160 = arith.constant 160 : index
    %c0_104 = arith.constant 0 : index
    %239 = vector.load %arg26[%c160, %c0_104] : memref<288x256xbf16, #tpu.memory_space<vmem>>, vector<32x256xbf16>
    tpu.vector_store %arg26[%c160, %c0_104], %220 {strides = array<i32>} : memref<288x256xbf16, #tpu.memory_space<vmem>>, vector<32x256xbf16>,
    %c192 = arith.constant 192 : index
    %c0_105 = arith.constant 0 : index
    %240 = vector.load %arg26[%c192, %c0_105] : memref<288x256xbf16, #tpu.memory_space<vmem>>, vector<32x256xbf16>
    tpu.vector_store %arg26[%c192, %c0_105], %226 {strides = array<i32>} : memref<288x256xbf16, #tpu.memory_space<vmem>>, vector<32x256xbf16>,
    %c224 = arith.constant 224 : index
    %c0_106 = arith.constant 0 : index
    %241 = vector.load %arg26[%c224, %c0_106] : memref<288x256xbf16, #tpu.memory_space<vmem>>, vector<32x256xbf16>
    tpu.vector_store %arg26[%c224, %c0_106], %227 {strides = array<i32>} : memref<288x256xbf16, #tpu.memory_space<vmem>>, vector<32x256xbf16>,
    %c256 = arith.constant 256 : index
    %c0_107 = arith.constant 0 : index
    %242 = vector.load %arg26[%c256, %c0_107] : memref<288x256xbf16, #tpu.memory_space<vmem>>, vector<32x256xbf16>
    tpu.vector_store %arg26[%c256, %c0_107], %233 {strides = array<i32>} : memref<288x256xbf16, #tpu.memory_space<vmem>>, vector<32x256xbf16>,
    %c0_108 = arith.constant 0 : index
    %c0_109 = arith.constant 0 : index
    %243 = vector.load %arg26[%c0_108, %c0_109] : memref<288x256xbf16, #tpu.memory_space<vmem>>, vector<288x256xbf16>
    %cst_110 = arith.constant dense<0.000000e+00> : vector<8x256xf32>
    %244 = tpu.matmul %77, %243, %cst_110 {dimension_numbers = #tpu.dot_dimension_numbers<[1], [0], [0], [1], [0, 0, 1, 1], [], []>} : vector<8x288xbf16>, vector<288x256xbf16>, vector<8x256xf32> -> vector<8x256xf32>
    %245 = vector.broadcast %78 : vector<8x1xf32> to vector<8x256xf32>
    %246 = arith.addf %244, %245 : vector<8x256xf32>
    %cst_111 = arith.constant 1.000000e+00 : f32
    %247 = vector.broadcast %cst_111 : f32 to vector<8x256xf32>
    %248 = arith.addf %246, %247 : vector<8x256xf32>
    %cst_112 = arith.constant 5.000000e-01 : f32
    %249 = vector.broadcast %cst_112 : f32 to vector<8x256xf32>
    %250 = arith.mulf %248, %249 : vector<8x256xf32>
    %251 = vector.shape_cast %72 : vector<8x1xi1> to vector<8x1xi1>
    %252 = vector.broadcast %251 : vector<8x1xi1> to vector<8x256xi1>
    %253 = arith.select %252, %250, %246 : vector<8x256xi1>, vector<8x256xf32>
    %c0_113 = arith.constant 0 : index
    %c0_114 = arith.constant 0 : index
    %c0_115 = arith.constant 0 : index
    %254 = vector.load %arg25[%c0_113, %c0_114, %c0_115] : memref<1x8x256xf32, #tpu.memory_space<vmem>>, vector<1x8x256xf32>
    %255 = vector.shape_cast %254 : vector<1x8x256xf32> to vector<8x256xf32>
    %256 = vector.shape_cast %253 : vector<8x256xf32> to vector<1x8x256xf32>
    tpu.vector_store %arg25[%c0_113, %c0_114, %c0_115], %256 {strides = array<i32>} : memref<1x8x256xf32, #tpu.memory_space<vmem>>, vector<1x8x256xf32>,
    return
  }
  func.func @transform_0(%arg0: i32) -> (i32, i32, i32) {
    %c0_i32 = arith.constant 0 : i32
    %c0_i32_0 = arith.constant 0 : i32
    %c0_i32_1 = arith.constant 0 : i32
    return %arg0, %c0_i32, %c0_i32_0 : i32, i32, i32
  }
  func.func @transform_1(%arg0: i32) -> (i32, i32) {
    %c0_i32 = arith.constant 0 : i32
    %c0_i32_0 = arith.constant 0 : i32
    %c0_i32_1 = arith.constant 0 : i32
    return %c0_i32, %c0_i32_0 : i32, i32
  }
  func.func @transform_2(%arg0: i32) -> (i32, i32) {
    %c0_i32 = arith.constant 0 : i32
    %c0_i32_0 = arith.constant 0 : i32
    %c0_i32_1 = arith.constant 0 : i32
    return %c0_i32, %c0_i32_0 : i32, i32
  }
  func.func @transform_3(%arg0: i32) -> (i32, i32) {
    %c0_i32 = arith.constant 0 : i32
    %c0_i32_0 = arith.constant 0 : i32
    %c0_i32_1 = arith.constant 0 : i32
    return %c0_i32, %c0_i32_0 : i32, i32
  }
  func.func @transform_4(%arg0: i32) -> (i32, i32) {
    %c0_i32 = arith.constant 0 : i32
    %c0_i32_0 = arith.constant 0 : i32
    %c0_i32_1 = arith.constant 0 : i32
    return %c0_i32, %c0_i32_0 : i32, i32
  }
  func.func @transform_5(%arg0: i32) -> (i32, i32) {
    %c0_i32 = arith.constant 0 : i32
    %c0_i32_0 = arith.constant 0 : i32
    %c0_i32_1 = arith.constant 0 : i32
    return %c0_i32, %c0_i32_0 : i32, i32
  }
  func.func @transform_6(%arg0: i32) -> (i32, i32) {
    %c0_i32 = arith.constant 0 : i32
    %c0_i32_0 = arith.constant 0 : i32
    %c0_i32_1 = arith.constant 0 : i32
    return %c0_i32, %c0_i32_0 : i32, i32
  }
  func.func @transform_7(%arg0: i32) -> (i32, i32) {
    %c0_i32 = arith.constant 0 : i32
    %c0_i32_0 = arith.constant 0 : i32
    %c0_i32_1 = arith.constant 0 : i32
    return %c0_i32, %c0_i32_0 : i32, i32
  }
  func.func @transform_8(%arg0: i32) -> (i32, i32) {
    %c0_i32 = arith.constant 0 : i32
    %c0_i32_0 = arith.constant 0 : i32
    %c0_i32_1 = arith.constant 0 : i32
    return %c0_i32, %c0_i32_0 : i32, i32
  }
  func.func @transform_9(%arg0: i32) -> (i32, i32) {
    %c0_i32 = arith.constant 0 : i32
    %c0_i32_0 = arith.constant 0 : i32
    %c0_i32_1 = arith.constant 0 : i32
    return %c0_i32, %c0_i32_0 : i32, i32
  }
  func.func @transform_10(%arg0: i32) -> (i32, i32) {
    %c0_i32 = arith.constant 0 : i32
    %c0_i32_0 = arith.constant 0 : i32
    %c0_i32_1 = arith.constant 0 : i32
    return %c0_i32, %c0_i32_0 : i32, i32
  }
  func.func @transform_11(%arg0: i32) -> (i32, i32) {
    %c0_i32 = arith.constant 0 : i32
    %c0_i32_0 = arith.constant 0 : i32
    %c0_i32_1 = arith.constant 0 : i32
    return %c0_i32, %c0_i32_0 : i32, i32
  }
  func.func @transform_12(%arg0: i32) -> (i32, i32) {
    %c0_i32 = arith.constant 0 : i32
    %c0_i32_0 = arith.constant 0 : i32
    %c0_i32_1 = arith.constant 0 : i32
    return %c0_i32, %c0_i32_0 : i32, i32
  }
  func.func @transform_13(%arg0: i32) -> (i32, i32) {
    %c0_i32 = arith.constant 0 : i32
    %c0_i32_0 = arith.constant 0 : i32
    %c0_i32_1 = arith.constant 0 : i32
    return %c0_i32, %c0_i32_0 : i32, i32
  }
  func.func @transform_14(%arg0: i32) -> (i32, i32) {
    %c0_i32 = arith.constant 0 : i32
    %c0_i32_0 = arith.constant 0 : i32
    %c0_i32_1 = arith.constant 0 : i32
    return %c0_i32, %c0_i32_0 : i32, i32
  }
  func.func @transform_15(%arg0: i32) -> (i32, i32) {
    %c0_i32 = arith.constant 0 : i32
    %c0_i32_0 = arith.constant 0 : i32
    %c0_i32_1 = arith.constant 0 : i32
    return %c0_i32, %c0_i32_0 : i32, i32
  }
  func.func @transform_16(%arg0: i32) -> (i32, i32) {
    %c0_i32 = arith.constant 0 : i32
    %c0_i32_0 = arith.constant 0 : i32
    %c0_i32_1 = arith.constant 0 : i32
    return %c0_i32, %c0_i32_0 : i32, i32
  }
  func.func @transform_17(%arg0: i32) -> (i32, i32) {
    %c0_i32 = arith.constant 0 : i32
    %c0_i32_0 = arith.constant 0 : i32
    %c0_i32_1 = arith.constant 0 : i32
    return %c0_i32, %c0_i32_0 : i32, i32
  }
  func.func @transform_18(%arg0: i32) -> (i32, i32) {
    %c0_i32 = arith.constant 0 : i32
    %c0_i32_0 = arith.constant 0 : i32
    %c0_i32_1 = arith.constant 0 : i32
    return %c0_i32, %c0_i32_0 : i32, i32
  }
  func.func @transform_19(%arg0: i32) -> (i32, i32) {
    %c0_i32 = arith.constant 0 : i32
    %c0_i32_0 = arith.constant 0 : i32
    %c0_i32_1 = arith.constant 0 : i32
    return %c0_i32, %c0_i32_0 : i32, i32
  }
  func.func @transform_20(%arg0: i32) -> (i32, i32) {
    %c0_i32 = arith.constant 0 : i32
    %c0_i32_0 = arith.constant 0 : i32
    %c0_i32_1 = arith.constant 0 : i32
    return %c0_i32, %c0_i32_0 : i32, i32
  }
  func.func @transform_21(%arg0: i32) -> (i32, i32) {
    %c0_i32 = arith.constant 0 : i32
    %c0_i32_0 = arith.constant 0 : i32
    %c0_i32_1 = arith.constant 0 : i32
    return %c0_i32, %c0_i32_0 : i32, i32
  }
  func.func @transform_22(%arg0: i32) -> (i32, i32) {
    %c0_i32 = arith.constant 0 : i32
    %c0_i32_0 = arith.constant 0 : i32
    %c0_i32_1 = arith.constant 0 : i32
    return %c0_i32, %c0_i32_0 : i32, i32
  }
  func.func @transform_23(%arg0: i32) -> (i32, i32) {
    %c0_i32 = arith.constant 0 : i32
    %c0_i32_0 = arith.constant 0 : i32
    %c0_i32_1 = arith.constant 0 : i32
    return %c0_i32, %c0_i32_0 : i32, i32
  }
  func.func @transform_24(%arg0: i32) -> (i32, i32, i32) {
    %c0_i32 = arith.constant 0 : i32
    %c0_i32_0 = arith.constant 0 : i32
    %c0_i32_1 = arith.constant 0 : i32
    return %arg0, %c0_i32, %c0_i32_0 : i32, i32, i32
  }
}

</mosaic_0001>

<bundles_post_ra>
// kernel: adm_forward.1
= control target key start
LH: loop header
LB: loop body
LE: loop exit
PB: predicated region body
PF: predicated region fallthrough
CT: control target
= control target key end

     0   :  { %s4963_s0 = inlined_call_operand.vmem [shape: f32[2,4,256], index: 0, kind: input, shape index: {}]   ;;  %s4964_s1 = inlined_call_operand.vmem [shape: f32[32,2], index: 1, kind: input, shape index: {}]   ;;  %s4965_s2 = inlined_call_operand.vmem [shape: f32[32,2], index: 2, kind: input, shape index: {}]   ;;  %s4966_s3 = inlined_call_operand.vmem [shape: f32[32,2], index: 3, kind: input, shape index: {}]   ;;  %s4967_s4 = inlined_call_operand.vmem [shape: f32[32,32], index: 4, kind: input, shape index: {}]   ;;  %s4968_s5 = inlined_call_operand.vmem [shape: f32[32,1], index: 5, kind: input, shape index: {}]   ;;  %s4969_s6 = inlined_call_operand.vmem [shape: f32[32,32], index: 6, kind: input, shape index: {}]   ;;  %s4970_s7 = inlined_call_operand.vmem [shape: f32[32,1], index: 7, kind: input, shape index: {}]   ;;  %s4971_s8 = inlined_call_operand.vmem [shape: f32[32,32], index: 8, kind: input, shape index: {}]   ;;  %s4972_s9 = inlined_call_operand.vmem [shape: f32[32,1], index: 9, kind: input, shape index: {}]   ;;  %s4973_s10 = inlined_call_operand.vmem [shape: f32[32,32], index: 10, kind: input, shape index: {}]   ;;  %s4974_s11 = inlined_call_operand.vmem [shape: f32[32,1], index: 11, kind: input, shape index: {}]   ;;  %s4975_s12 = inlined_call_operand.vmem [shape: f32[32,32], index: 12, kind: input, shape index: {}]   ;;  %s4976_s13 = inlined_call_operand.vmem [shape: f32[32,1], index: 13, kind: input, shape index: {}]   ;;  %s4977_s14 = inlined_call_operand.vmem [shape: f32[32,32], index: 14, kind: input, shape index: {}]   ;;  %s4978_s15 = inlined_call_operand.vmem [shape: f32[32,1], index: 15, kind: input, shape index: {}]   ;;  %s4979_s16 = inlined_call_operand.vmem [shape: f32[32,32], index: 16, kind: input, shape index: {}]   ;;  %s4980_s17 = inlined_call_operand.vmem [shape: f32[32,1], index: 17, kind: input, shape index: {}]   ;;  %s4981_s18 = inlined_call_operand.vmem [shape: f32[32,32], index: 18, kind: input, shape index: {}]   ;;  %s4982_s19 = inlined_call_operand.vmem [shape: f32[32,32], index: 19, kind: input, shape index: {}]   ;;  %s4983_s20 = inlined_call_operand.vmem [shape: bf16[32,36], index: 20, kind: input, shape index: {}]   ;;  %s4984_s21 = inlined_call_operand.vmem [shape: f32[32,1], index: 21, kind: input, shape index: {}]   ;;  %s4985_s22 = inlined_call_operand.vmem [shape: bf16[8,288], index: 22, kind: input, shape index: {}]   ;;  %s4986_s23 = inlined_call_operand.vmem [shape: f32[8,1], index: 23, kind: input, shape index: {}]   ;;  %s4987_s24 = inlined_call_operand.vmem [shape: f32[2,8,256], index: 24, kind: output, shape index: {}]  }
   0x1   :  { %5039 = sst [smem:[#allocation5_spill]] %s4963_s0 }
   0x2   :  { %5040 = sst [smem:[#allocation6_spill]] %s4964_s1 }
   0x3   :  { %5041 = sst [smem:[#allocation7_spill]] %s4965_s2 }
   0x4   :  { %5042 = sst [smem:[#allocation8_spill]] %s4966_s3 }
   0x5   :  { %5043 = sst [smem:[#allocation9_spill]] %s4967_s4 }
   0x6   :  { %5044 = sst [smem:[#allocation10_spill]] %s4968_s5  ;;  %s3892_s5 = smov 0  }
   0x7   :  { %5045 = sst [smem:[#allocation11_spill]] %s4969_s6 }
   0x8   :  { %5046 = sst [smem:[#allocation12_spill]] %s4970_s7 }
   0x9   :  { %5047 = sst [smem:[#allocation13_spill]] %s4971_s8 }
   0xa LB: > { %s3898_s26 = sadd.s32 4294967295, %s3750_s5   ;;  %p3205_p0 = scmp.ge.s32.totalorder %s3750_s5, 1  ;;  %s3750_s5 = sphi %s3892_s5, %s34_s5  }
   0xb   : > { %p662_p1 = scmp.lt.s32.totalorder %s3750_s5, 3 }
   0xd   : > { %p663_p2 = pnand %p3205_p0, %p662_p1 }
   0xf   : > { %666 = sbr.rel (%p663_p2) target bundleno = 1769 (0x6e9), region = 116 }
  0x16   : > { %s5048_s6 = sld [smem:[#allocation10_spill]]  ;;  %s5049_s0 = sld [smem:[#allocation6_spill]]  ;;  %v5028_v3 = vmov 0   ;;  %vm773_vm0 = vcmask 261120   ;;  %v1778_v16 = vld [vmem:[%s4979_s16] sm:$0xff]  ;;  %v2073_v19 = vlaneseq  ;;  %v1779_v23 = vld [vmem:[%s4979_s16 + $0x8] sm:$0xff] }
  0x17   : > { %3660 = vset.pattern.permute.xlu0 %v5028_v3  ;;  %s5050_s8 = sld [smem:[#allocation8_spill]]  ;;  %3661 = vset.pattern.permute.xlu1 %v5028_v3  ;;  %s5051_s4 = sld [smem:[#allocation9_spill]]  ;;  %v1780_v26 = vld [vmem:[%s4979_s16 + $0x10] sm:$0xff]  ;;  %v1133_v27 = vld [vmem:[%s4972_s9] sm:$0xff]  ;;  %v1134_v29 = vld [vmem:[%s4972_s9 + $0x8] sm:$0xff]  ;;  %vm2110_vm7 = vcmask 138240  }
  0x18   : > { %3493 = vmatprep.mubr.msk.f32.mxu0 %vm773_vm0, %v1778_v16  ;;  %s5052_s28 = sld [smem:[#allocation12_spill]]  ;;  %v3971_v25 = vand.u32 127, %v2073_v19  ;;  %v1781_v30 = vld [vmem:[%s4979_s16 + $0x18] sm:$0xff]  ;;  %p728_p3 = scmp.lt.s32.totalorder %s3898_s26, 1  ;;  %v1135_v36 = vld [vmem:[%s4972_s9 + $0x10] sm:$0xff]  ;;  %v4012_v38 = vshrl.u32 %v2073_v19, 7 }
  0x19   : > { %v1136_v37 = vld [vmem:[%s4972_s9 + $0x18] sm:$0xff]  ;;  %v1270_v39 = vld [vmem:[%s4974_s11] sm:$0xff]  ;;  %v1271_v40 = vld [vmem:[%s4974_s11 + $0x8] sm:$0xff]  ;;  %s5054_s29 = sld [smem:[#allocation5_spill]]  ;;  %s3753_s3 = smov 2   ;;  %vm2157_vm11 = vcmask 15360  }
  0x1a   : > { %v2075_v31 = vadd.s32 128, %v3971_v25  ;;  %v2076_v34 = vand.u32 15, %v3971_v25  ;;  %s4010_s27 = scalar_select %p728_p3, %s3898_s26, 1  ;;  %5053 = vst [vmem:[#allocation3_spill] sm:$0xff] %v4012_v38  ;;  %v2129_v41 = vsub.s32 0, %v4012_v38  ;;  %v1272_v42 = vld [vmem:[%s4974_s11 + $0x10] sm:$0xff] }
  0x1b   : > { %v2133_v44 = vsub.s32 4, %v4012_v38  ;;  %v1273_v45 = vld [vmem:[%s4974_s11 + $0x18] sm:$0xff]  ;;  %s3756_s25 = smov 18   ;;  %s3757_s1 = smov 32   ;;  %v1455_v55 = vld [vmem:[%s4978_s15] sm:$0xff]  ;;  %v1456_v56 = vld [vmem:[%s4978_s15 + $0x8] sm:$0xff] }
  0x1c   : > { %v749_v0 = vld [vmem:[%s5048_s6] sm:$0xff]  ;;  %v746_v2 = vld [vmem:[%s5049_s0 + $0x8] sm:$0xff]  ;;  %v751_v7 = vld [vmem:[%s5048_s6 + $0x10] sm:$0xff]  ;;  %v2077_v35 = vand.u32 15, %v2075_v31  ;;  %vm2080_vm1 = vcmp.ne.s32.totalorder %v2076_v34, 15  ;;  %s3281_s30 = sshll.u32 %s4010_s27, 3 }
  0x1d   : > { %v745_v1 = vld [vmem:[%s5049_s0] sm:$0xff]  ;;  %v1166_v6 = vld [vmem:[%s5050_s8 + $0x8] sm:$0xff]  ;;  %755 = vperm.xlu0 %3660, %v749_v0   ;;  %765 = vperm.xlu1 %3661, %v751_v7   ;;  %v747_v9 = vld [vmem:[%s5049_s0 + $0x10] sm:$0xff]  ;;  %vm2078_vm4 = vcmp.ne.s32.totalorder %v2076_v34, 0  ;;  %s3758_s2 = smov 34   ;;  %s5011_s7 = smov 111  }
  0x1e   : > { %v3527_v4 = vpack.c.bf16 %v746_v2, %v745_v1  ;;  %v1165_v5 = vld [vmem:[%s5050_s8] sm:$0xff]  ;;  %v748_v10 = vld [vmem:[%s5049_s0 + $0x18] sm:$0xff]  ;;  %v750_v11 = vld [vmem:[%s5048_s6 + $0x8] sm:$0xff]  ;;  %vm2081_vm2 = vcmp.ne.s32.totalorder %v2077_v35, 15  ;;  %vm2079_vm5 = vcmp.ne.s32.totalorder %v2077_v35, 0  ;;  %s5013_s0 = smov 127  }
  0x1f   : > { %v3922_v8 = vpack.c.bf16 %v1166_v6, %v1165_v5  ;;  %v3531_v12 = vpack.c.bf16 %v748_v10, %v747_v9  ;;  %v1167_v13 = vld [vmem:[%s5050_s8 + $0x10] sm:$0xff]  ;;  %v1168_v14 = vld [vmem:[%s5050_s8 + $0x18] sm:$0xff]  ;;  %v741_v18 = vld [vmem:[%s5051_s4] sm:$0xff] }
  0x20   : > { %3528 = vmatprep.subr.bf16.mxu1 %v3527_v4  ;;  %v3940_v15 = vpack.c.bf16 %v1168_v14, %v1167_v13  ;;  %v752_v17 = vld [vmem:[%s5048_s6 + $0x18] sm:$0xff]  ;;  %v903_v20 = vld [vmem:[%s5052_s28] sm:$0xff]  ;;  %3381 = vmatprep.mubr.msk.f32.mxu1 %vm773_vm0, %v741_v18  ;;  %v742_v21 = vld [vmem:[%s5051_s4 + $0x8] sm:$0xff]  ;;  %s5058_s6 = sld [smem:[#allocation13_spill]] }
  0x21   : > { %3592 = vmatprep.subr.bf16.mxu0 %v3922_v8  ;;  %3530 = vmatpush3.bf16.msra.mxu1 %v3527_v4  ;;  %v904_v22 = vld [vmem:[%s5052_s28 + $0x8] sm:$0xff]  ;;  %v743_v24 = vld [vmem:[%s5051_s4 + $0x10] sm:$0xff]  ;;  %v744_v28 = vld [vmem:[%s5051_s4 + $0x18] sm:$0xff]  ;;  %s732_s4 = scalar_lea.vmem %s5054_s29, %s3281_s30  ;;  %s4998_s30 = smov 17  }
  0x22   : > { %3594 = vmatpush3.bf16.msra.mxu0 %v3922_v8  ;;  %3532 = vmatprep.subr.bf16.mxu1 %v3531_v12  ;;  %v905_v32 = vld [vmem:[%s5052_s28 + $0x10] sm:$0xff]  ;;  %v906_v33 = vld [vmem:[%s5052_s28 + $0x18] sm:$0xff]  ;;  %vm2143_vm3 = vmpackc.low %vm2081_vm2, %vm2080_vm1  ;;  %vm2181_vm2 = vcmask 146432   ;;  %s5018_s29 = smov 94  }
  0x23   : > { %760 = vperm.xlu0 %3660, %v750_v11   ;;  %3596 = vmatprep.subr.bf16.mxu0 %v3940_v15  ;;  %v2144_v43 = vsel %vm2143_vm3, 65537, %v5028_v3  ;;  %v2098_v47 = vld [vmem:[%s732_s4] sm:$0xff]  ;;  %vm2125_vm6 = vmpackc.low %vm2079_vm5, %vm2078_vm4  ;;  %s3755_s4 = smov 16   ;;  %v1457_v57 = vld [vmem:[%s4978_s15 + $0x10] sm:$0xff]  ;;  %vm2169_vm3 = vcmask 130048  }
  0x24   : > { %770 = vperm.xlu1 %3661, %v752_v17   ;;  %v2148_v46 = vrot.slane %v2144_v43, %v2129_v41  ;;  %v2152_v48 = vrot.slane %v2144_v43, %v2133_v44  ;;  %v2100_v49 = vcombine.high %v2098_v47, %v2098_v47  ;;  %v2102_v50 = vpack.c.bf16 %v2098_v47, %v2098_v47  ;;  %v1458_v58 = vld [vmem:[%s4978_s15 + $0x18] sm:$0xff]  ;;  %v1782_v59 = vld [vmem:[%s4980_s17] sm:$0xff]  ;;  %v1783_v60 = vld [vmem:[%s4980_s17 + $0x8] sm:$0xff] }
  0x25   : > { %3534 = vmatpush3.bf16.msra.mxu1 %v3531_v12  ;;  %v2126_v52 = vsel %vm2125_vm6, 65537, %v5028_v3  ;;  %v1784_v61 = vld [vmem:[%s4980_s17 + $0x10] sm:$0xff]  ;;  %v1785_v62 = vld [vmem:[%s4980_s17 + $0x18] sm:$0xff] }
  0x26   : > { %3598 = vmatpush3.bf16.msra.mxu0 %v3940_v15  ;;  %v2103_v51 = vpack.c.bf16 %v2100_v49, %v2100_v49  ;;  %v4035_v53 = vrot.slane %v2126_v52, %v2129_v41  ;;  %v4038_v54 = vrot.slane %v2126_v52, %v2133_v44 }
  0x27   : > { %909 = vperm.xlu0 %3660, %v903_v20  }
  0x28   : > { %3382 = vmatmul.mubr.msk.f32.vlgmr.msra.gmra.mrb[0].mxu1 %vm773_vm0, %v742_v21  ;;  %914 = vperm.xlu1 %3661, %v904_v22  }
  0x29   : > { %3494 = vmatmul.mubr.msk.f32.vlgmr.msra.gmra.mrb[0].mxu0 %vm773_vm0, %v1779_v23  ;;  %3384 = vmatprep.mubr.msk.f32.mxu1 %vm773_vm0, %v743_v24 }
  0x2a   : > { %3496 = vmatprep.mubr.msk.f32.mxu0 %vm773_vm0, %v1780_v26 }
  0x2b   : > { %1139 = vperm.xlu0 %3660, %v1133_v27  }
  0x2c   : > { %3385 = vmatmul.mubr.msk.f32.gmra.mrb[2].mxu1 %vm773_vm0, %v744_v28  ;;  %1144 = vperm.xlu1 %3661, %v1134_v29  }
  0x2d   : > { %3497 = vmatmul.mubr.msk.f32.gmra.mrb[2].mxu0 %vm773_vm0, %v1781_v30 }
  0x2f   : > { %919 = vperm.xlu0 %3660, %v905_v32  }
  0x30   : > { %924 = vperm.xlu1 %3661, %v906_v33  }
  0x33   : > { %1149 = vperm.xlu0 %3660, %v1135_v36  }
  0x34   : > { %1154 = vperm.xlu1 %3661, %v1136_v37  }
  0x37   : > { %1276 = vperm.xlu0 %3660, %v1270_v39  }
  0x38   : > { %1281 = vperm.xlu1 %3661, %v1271_v40  }
  0x3b   : > { %1286 = vperm.xlu0 %3660, %v1272_v42  }
  0x3c   : > { %1291 = vperm.xlu1 %3661, %v1273_v45  }
  0x3f   : > { %2153 = vrot.lane.b32.xlu0 %v2148_v46, %s3753_s3 }
  0x40   : > { %2155 = vrot.lane.b32.xlu1 %v2152_v48, %s3753_s3  ;;  %s5007_s3 = smov 112  }
  0x43   : > { %2106 = vrot.lane.b32.xlu0 %v2102_v50, %s4998_s30 }
  0x44   : > { %2108 = vrot.lane.b32.xlu1 %v2103_v51, %s4998_s30  ;;  %s5009_s30 = smov 126  }
  0x47   : > { %2165 = vrot.lane.b32.xlu0 %v4035_v53, %s3755_s4 }
  0x48   : > { %2167 = vrot.lane.b32.xlu1 %v4038_v54, %s3755_s4  ;;  %s5003_s4 = smov 96  }
  0x4b   : > { %2177 = vrot.lane.b32.xlu0 %v2148_v46, %s3756_s25 }
  0x4c   : > { %2179 = vrot.lane.b32.xlu1 %v2152_v48, %s3756_s25  ;;  %s5005_s25 = smov 110  }
  0x4f   : > { %2189 = vrot.lane.b32.xlu0 %v4035_v53, %s3757_s1 }
  0x50   : > { %2191 = vrot.lane.b32.xlu1 %v4038_v54, %s3757_s1  ;;  %s5055_s1 = sld [smem:[#allocation11_spill]] }
  0x53   : > { %1461 = vperm.xlu0 %3660, %v1455_v55  }
  0x54   : > { %1466 = vperm.xlu1 %3661, %v1456_v56  }
  0x56   : > { %v899_v2 = vld [vmem:[%s5055_s1] sm:$0xff] }
  0x57   : > { %1471 = vperm.xlu0 %3660, %v1457_v57   ;;  %3395 = vmatprep.mubr.msk.f32.mxu1 %vm773_vm0, %v899_v2 }
  0x58   : > { %1476 = vperm.xlu1 %3661, %v1458_v58  }
  0x5b   : > { %2201 = vrot.lane.b32.xlu0 %v2148_v46, %s3758_s2 }
  0x5c   : > { %2203 = vrot.lane.b32.xlu1 %v2152_v48, %s3758_s2  ;;  %s5015_s2 = smov 95  }
  0x5f   : > { %1788 = vperm.xlu0 %3660, %v1782_v59  }
  0x60   : > { %1793 = vperm.xlu1 %3661, %v1783_v60  }
  0x63   : > { %1798 = vperm.xlu0 %3660, %v1784_v61  }
  0x64   : > { %1803 = vperm.xlu1 %3661, %v1785_v62  }
  0x9c   : > { %v4068_v63 = vpop.permute.xlu0 %755  ;;  %v4070_v0 = vpop.permute.xlu1 %765 }
  0xa2   : > { %v4072_v1 = vpop.permute.xlu0 %760 }
  0xa3   : > { %v4077_v4 = vpop.permute.xlu1 %770 }
  0xa6   : > { %v4080_v5 = vpop.permute.xlu0 %909 }
  0xa7   : > { %v4082_v6 = vpop.permute.xlu1 %914 }
  0xaa   : > { %v4084_v7 = vpop.permute.xlu0 %1139 }
  0xab   : > { %v4086_v9 = vpop.permute.xlu1 %1144 }
  0xae   : > { %v4088_v10 = vpop.permute.xlu0 %919 }
  0xaf   : > { %v4090_v11 = vpop.permute.xlu1 %924 }
  0xb2   : > { %v4092_v12 = vpop.permute.xlu0 %1149 }
  0xb3   : > { %v4094_v13 = vpop.permute.xlu1 %1154 }
  0xb6   : > { %v4096_v14 = vpop.permute.xlu0 %1276 }
  0xb7   : > { %v4098_v16 = vpop.permute.xlu1 %1281 }
  0xba   : > { %v4100_v17 = vpop.permute.xlu0 %1286 }
  0xbb   : > { %v4102_v18 = vpop.permute.xlu1 %1291 }
  0xbe   : > { %v4104_v19 = vpop.permute.xlu0 %2153 }
  0xbf   : > { %v4106_v20 = vpop.permute.xlu1 %2155  ;;  %vm2159_vm8 = vcmp.ne.s16.totalorder %v4104_v19, 0 }
  0xc0   : > { %vm2161_vm9 = vcmp.ne.s16.totalorder %v4106_v20, 0  ;;  %v4155_v41 = vsel %vm2157_vm11, %v4104_v19, %v4106_v20 }
  0xc1   : > { %vm2160_vm15 = vcmp.ne.s16.totalorder %v4155_v41, 0 }
  0xc2   : > { %v2107_v21 = vpop.permute.xlu0 %2106 }
  0xc3   : > { %v4109_v22 = vsel %vm2110_vm7, 0, %v2107_v21  ;;  %v2109_v23 = vpop.permute.xlu1 %2108 }
  0xc4   : > { %2257 = vrot.lane.b32.xlu1 %v4109_v22, %s5011_s7  ;;  %v2215_v24 = vrot.slane %v4109_v22, 6  ;;  %v4115_v26 = vsel %vm2110_vm7, %v2107_v21, %v2109_v23  ;;  %v4118_v27 = vsel %vm2110_vm7, %v2109_v23, 0  ;;  %v2162_v31 = vsel %vm2159_vm8, %v4109_v22, 0 }
  0xc5   : > { %v2217_v30 = vrot.slane %v4118_v27, 6  ;;  %v2216_v32 = vrot.slane %v4115_v26, 6  ;;  %v2164_v34 = vsel %vm2161_vm9, %v4118_v27, 0  ;;  %v2230_v35 = vrot.slane %v2162_v31, 4 }
  0xc6   : > { %2218 = vrot.lane.b32.xlu0 %v2215_v24, %s5013_s0  ;;  %v4122_v28 = vpop.permute.xlu0 %2165  ;;  %v2232_v39 = vrot.slane %v2164_v34, 4  ;;  %v2163_v48 = vsel %vm2160_vm15, %v4115_v26, 0  ;;  %v2298_v62 = vrot.slane %v4118_v27, 2 }
  0xc7   : > { %v4124_v29 = vpop.permute.xlu1 %2167  ;;  %vm5036_vm12 = vcmp.ne.s16.totalorder %v4122_v28, 0  ;;  %v2231_v56 = vrot.slane %v2163_v48, 4  ;;  %v1303_v48 = vld [vmem:[%s4976_s13 + $0x8] sm:$0xff] }
  0xc8   : > { %2259 = vrot.lane.b32.xlu1 %v4115_v26, %s5011_s7  ;;  %vm5027_vm10 = vcmp.ne.s16.totalorder %v4124_v29, 0  ;;  %v2174_v42 = vsel %vm5036_vm12, %v4109_v22, 0  ;;  %v4192_v57 = vsel %vm2169_vm3, %v4122_v28, %v4124_v29  ;;  %vm5038_vm12 = vcmask 785408  }
  0xc9   : > { %v2176_v36 = vsel %vm5027_vm10, %v4118_v27, 0  ;;  %v2245_v45 = vrot.slane %v2174_v42, 2  ;;  %vm5037_vm6 = vcmp.ne.s16.totalorder %v4192_v57, 0  ;;  %vm2332_vm10 = vcmask 1045504  }
  0xca   : > { %2261 = vrot.lane.b32.xlu0 %v4118_v27, %s5011_s7  ;;  %v4136_v33 = vpop.permute.xlu0 %2177  ;;  %v2247_v43 = vrot.slane %v2176_v36, 2  ;;  %v2175_v24 = vsel %vm5037_vm6, %v4115_v26, 0  ;;  %vm2305_vm6 = vcmask 777216   ;;  %s5064_s7 = smov 111  }
  0xcb   : > { %v4147_v37 = vpop.permute.xlu1 %2179  ;;  %vm5025_vm1 = vcmp.ne.s16.totalorder %v4136_v33, 0  ;;  %v2246_v34 = vrot.slane %v2175_v24, 2 }
  0xcc   : > { %2222 = vrot.lane.b32.xlu1 %v2217_v30, %s5013_s0  ;;  %vm5024_vm14 = vcmp.ne.s16.totalorder %v4147_v37, 0  ;;  %v4181_v51 = vsel %vm2181_vm2, %v4136_v33, %v4147_v37  ;;  %v2186_v52 = vsel %vm5025_vm1, %v4109_v22, 0  ;;  %vm2136_vm1 = vcmp.ne.s16.totalorder %v4038_v54, 0 }
  0xcd   : > { %v2188_v46 = vsel %vm5024_vm14, %v4118_v27, 0  ;;  %vm5026_vm5 = vcmp.ne.s16.totalorder %v4181_v51, 0  ;;  %v2269_v58 = vrot.slane %v2186_v52, 6  ;;  %v1304_v52 = vld [vmem:[%s4976_s13 + $0x10] sm:$0xff]  ;;  %vm2327_vm14 = vcmask 1043456  }
  0xce   : > { %2220 = vrot.lane.b32.xlu0 %v2216_v32, %s5013_s0  ;;  %v4150_v40 = vpop.permute.xlu0 %2189  ;;  %v2271_v50 = vrot.slane %v2188_v46, 6  ;;  %v2187_v2 = vsel %vm5026_vm5, %v4115_v26, 0  ;;  %s5057_s0 = sld [smem:[#allocation7_spill]]  ;;  %vm5033_vm5 = vcmask 916480  }
  0xcf   : > { %vm5001_vm13 = vcmp.ne.s16.totalorder %v4150_v40, 0  ;;  %v4176_v49 = vpop.permute.xlu1 %2191  ;;  %v2270_v30 = vrot.slane %v2187_v2, 6 }
  0xd0   : > { %2233 = vrot.lane.b32.xlu1 %v2230_v35, %s5009_s30  ;;  %v2198_v44 = vsel %vm5001_vm13, %v4109_v22, 0  ;;  %vm5000_vm4 = vcmp.ne.s16.totalorder %v4176_v49, 0  ;;  %v4201_v60 = vsel %vm773_vm0, %v4150_v40, %v4176_v49 }
  0xd1   : > { %v2284_v47 = vrot.slane %v2198_v44, 4  ;;  %v2200_v61 = vsel %vm5000_vm4, %v4118_v27, 0  ;;  %vm5002_vm2 = vcmp.ne.s16.totalorder %v4201_v60, 0  ;;  %vm2205_vm4 = vcmask 277504  }
  0xd2   : > { %2237 = vrot.lane.b32.xlu0 %v2232_v39, %s5009_s30  ;;  %v4186_v55 = vpop.permute.xlu0 %1461  ;;  %v2286_v23 = vrot.slane %v2200_v61, 4  ;;  %v2199_v32 = vsel %vm5002_vm2, %v4115_v26, 0  ;;  %v2297_v39 = vrot.slane %v4115_v26, 2 }
  0xd3   : > { %v4196_v59 = vpop.permute.xlu1 %1466  ;;  %v2285_v36 = vrot.slane %v2199_v32, 4 }
  0xd4   : > { %2252 = vrot.lane.b32.xlu1 %v2247_v43, %s5007_s3 }
  0xd6   : > { %2248 = vrot.lane.b32.xlu0 %v2245_v45, %s5007_s3  ;;  %v4212_v21 = vpop.permute.xlu0 %1471  ;;  %v2296_v45 = vrot.slane %v4109_v22, 2 }
  0xd7   : > { %v4220_v31 = vpop.permute.xlu1 %1476 }
  0xd8   : > { %2287 = vrot.lane.b32.xlu1 %v2284_v47, %s5003_s4 }
  0xda   : > { %2276 = vrot.lane.b32.xlu0 %v2271_v50, %s5005_s25  ;;  %v4226_v35 = vpop.permute.xlu0 %2201  ;;  %v1302_v50 = vld [vmem:[%s4976_s13] sm:$0xff] }
  0xdb   : > { %vm5022_vm3 = vcmp.ne.s16.totalorder %v4226_v35, 0  ;;  %v4232_v42 = vpop.permute.xlu1 %2203 }
  0xdc   : > { %2235 = vrot.lane.b32.xlu1 %v2231_v56, %s5009_s30  ;;  %5056 = vst [vmem:[#allocation4_spill] sm:$0xff] %v4232_v42  ;;  %v2210_v43 = vsel %vm5022_vm3, %v4109_v22, 0  ;;  %v4240_v44 = vsel %vm2205_vm4, %v4226_v35, %v4232_v42  ;;  %vm5021_vm13 = vcmp.ne.s16.totalorder %v4232_v42, 0  ;;  %vm2135_vm4 = vcmp.ne.s16.totalorder %v4035_v53, 0  ;;  %s5065_s30 = smov 95  }
  0xdd   : > { %vm5023_vm2 = vcmp.ne.s16.totalorder %v4240_v44, 0  ;;  %v2212_v46 = vsel %vm5021_vm13, %v4118_v27, 0  ;;  %v1305_v27 = vld [vmem:[%s4976_s13 + $0x18] sm:$0xff]  ;;  %vm5035_vm13 = vcmask 1039360   ;;  %vm2320_vm3 = vcmask 1041408  }
  0xde   : > { %2272 = vrot.lane.b32.xlu0 %v2269_v58, %s5005_s25  ;;  %v2211_v47 = vsel %vm5023_vm2, %v4115_v26, 0  ;;  %v2089_v58 = vld [vmem:[%s4984_s21] sm:$0xff]  ;;  %v1789_v61 = vpop.permute.xlu0 %1788  ;;  %vm5034_vm2 = vcmask 1031168  }
  0xdf   : > { %v1794_v56 = vpop.permute.xlu1 %1793 }
  0xe0   : > { %2303 = vrot.lane.b32.xlu1 %v2298_v62, %s5015_s2 }
  0xe2   : > { %2291 = vrot.lane.b32.xlu0 %v2286_v23, %s5003_s4 }
  0xe4   : > { %2274 = vrot.lane.b32.xlu1 %v2270_v30, %s5005_s25  ;;  %s5063_s25 = smov 127  }
  0xe6   : > { %2250 = vrot.lane.b32.xlu0 %v2246_v34, %s5007_s3  ;;  %s5066_s3 = smov 126  }
  0xe8   : > { %2289 = vrot.lane.b32.xlu1 %v2285_v36, %s5003_s4  ;;  %s5082_s4 = smov 96  }
  0xea   : > { %2301 = vrot.lane.b32.xlu0 %v2297_v39, %s5015_s2 }
  0xec   : > { %2311 = vrot.lane.b32.xlu1 %v2210_v43, %s5018_s29 }
  0xee   : > { %2299 = vrot.lane.b32.xlu0 %v2296_v45, %s5015_s2  ;;  %v1804_v45 = vpop.permute.xlu1 %1803  ;;  %s5075_s2 = smov 110  }
  0xf0   : > { %2315 = vrot.lane.b32.xlu1 %v2212_v46, %s5018_s29 }
  0xf2   : > { %2313 = vrot.lane.b32.xlu0 %v2211_v47, %s5018_s29  ;;  %s5068_s29 = smov 112  }
  0xf4   : > { %1313 = vperm.xlu1 %3661, %v1303_v48  }
  0xf6   : > { %1308 = vperm.xlu0 %3660, %v1302_v50  }
  0xf8   : > { %1323 = vperm.xlu1 %3661, %v1305_v27  }
  0xfa   : > { %1318 = vperm.xlu0 %3660, %v1304_v52  }
  0xfb   : > { %v3383_v62 = vpop.f32.mrb[0].mxu1 }
  0xfc   : > { %v858_v2 = vadd.f32 %v3383_v62, %v4072_v1  ;;  %v3495_v23 = vpop.f32.mrb[0].mxu0  ;;  %v852_v24 = vpop.f32.mrb[1].mxu1  ;;  %2357 = vperm.xlu1 %3661, %v2089_v58  }
  0xfd   : > { %v1890_v30 = vadd.f32 %v3495_v23, %v1794_v56  ;;  %v853_v32 = vadd.f32 %v852_v24, %v4068_v63  ;;  %v1884_v34 = vpop.f32.mrb[1].mxu0  ;;  %v1799_v1 = vpop.permute.xlu0 %1798 }
  0xfe   : > { %v3215_v36 = vmul.f32 -1.442695, %v858_v2  ;;  %v1885_v39 = vadd.f32 %v1884_v34, %v1789_v61 }
  0xff   : > { %v3214_v43 = vmul.f32 -1.442695, %v853_v32  ;;  %v3386_v46 = vpop.f32.mrb[2].mxu1 }
 0x100   : > { %3668 = vpow2.f32 %v3215_v36  ;;  %v4273_v47 = vpack.c.bf16 %v1890_v30, %v1885_v39  ;;  %v868_v48 = vadd.f32 %v3386_v46, %v4077_v4  ;;  %v3498_v50 = vpop.f32.mrb[2].mxu0  ;;  %v862_v27 = vpop.f32.mrb[3].mxu1 }
 0x101   : > { %3670 = vpow2.f32 %v3214_v43  ;;  %v1900_v52 = vadd.f32 %v3498_v50, %v1804_v45  ;;  %v863_v56 = vadd.f32 %v862_v27, %v4070_v0  ;;  %v1894_v58 = vpop.f32.mrb[3].mxu0 }
 0x102   : > { %v3217_v63 = vmul.f32 -1.442695, %v868_v48  ;;  %v1895_v62 = vadd.f32 %v1894_v58, %v1799_v1  ;;  %3608 = vmatprep.subr.bf16.mxu0 %v4273_v47 }
 0x103   : > { %v3216_v61 = vmul.f32 -1.442695, %v863_v56  ;;  %3610 = vmatpush3.bf16.msra.mxu0 %v4273_v47 }
 0x104   : > { %3672 = vpow2.f32 %v3217_v63  ;;  %v4279_v23 = vpack.c.bf16 %v1900_v52, %v1895_v62  ;;  %v1028_v62 = vld [vmem:[%s5057_s0] sm:$0xff] }
 0x105   : > { %3674 = vpow2.f32 %v3216_v61  ;;  %v1029_v61 = vld [vmem:[%s5057_s0 + $0x8] sm:$0xff] }
 0x106   : > { %3612 = vmatprep.subr.bf16.mxu0 %v4279_v23 }
 0x107   : > { %3614 = vmatpush3.bf16.msra.mxu0 %v4279_v23 }
 0x10a   : > { %v3669_v4 = vpop.eup %3668 }
 0x10b   : > { %v3671_v24 = vpop.eup %3670  ;;  %v884_v30 = vadd.f32 1.0, %v3669_v4 }
 0x10c   : > { %v883_v0 = vadd.f32 1.0, %v3671_v24 }
 0x10d   : > { %3676 = vrcp.f32 %v884_v30  ;;  %v4289_v30 = vpack.c.bf16 %v1029_v61, %v1028_v62 }
 0x10e   : > { %v3673_v34 = vpop.eup %3672  ;;  %3678 = vrcp.f32 %v883_v0 }
 0x10f   : > { %v3675_v36 = vpop.eup %3674  ;;  %v886_v39 = vadd.f32 1.0, %v3673_v34  ;;  %v902_v34 = vld [vmem:[%s5055_s1 + $0x18] sm:$0xff] }
 0x110   : > { %v885_v43 = vadd.f32 1.0, %v3675_v36  ;;  %v1024_v36 = vld [vmem:[%s5058_s6] sm:$0xff] }
 0x111   : > { %3680 = vrcp.f32 %v886_v39  ;;  %v1025_v39 = vld [vmem:[%s5058_s6 + $0x8] sm:$0xff] }
 0x112   : > { %3682 = vrcp.f32 %v885_v43  ;;  %v1026_v43 = vld [vmem:[%s5058_s6 + $0x10] sm:$0xff] }
 0x117   : > { %v3677_v45 = vpop.eup %3676 }
 0x118   : > { %v3679_v46 = vpop.eup %3678  ;;  %v896_v50 = vmul.f32 %v3677_v45, %v858_v2  ;;  %v1030_v2 = vld [vmem:[%s5057_s0 + $0x10] sm:$0xff]  ;;  %v1027_v45 = vld [vmem:[%s5058_s6 + $0x18] sm:$0xff] }
 0x119   : > { %v895_v27 = vmul.f32 %v3679_v46, %v853_v32  ;;  %v1031_v32 = vld [vmem:[%s5057_s0 + $0x18] sm:$0xff]  ;;  %v1161_v46 = vld [vmem:[%s4973_s10] sm:$0xff]  ;;  %s5062_s0 = smov 17  }
 0x11a   : > { %v4304_v0 = vpack.c.bf16 %v1031_v32, %v1030_v2 }
 0x11b   : > { %v3681_v1 = vpop.eup %3680  ;;  %v3535_v52 = vpack.c.bf16 %v896_v50, %v895_v27  ;;  %v1163_v50 = vld [vmem:[%s4973_s10 + $0x10] sm:$0xff]  ;;  %v1164_v27 = vld [vmem:[%s4973_s10 + $0x18] sm:$0xff] }
 0x11c   : > { %v3683_v58 = vpop.eup %3682  ;;  %v898_v63 = vmul.f32 %v3681_v1, %v868_v48  ;;  %v900_v48 = vld [vmem:[%s5055_s1 + $0x8] sm:$0xff] }
 0x11d   : > { %v897_v4 = vmul.f32 %v3683_v58, %v863_v56  ;;  %3536 = vmatprep.subr.bf16.mxu1 %v3535_v52  ;;  %v901_v56 = vld [vmem:[%s5055_s1 + $0x10] sm:$0xff] }
 0x11e   : > { %3538 = vmatpush3.bf16.msra.mxu1 %v3535_v52 }
 0x11f   : > { %v3539_v24 = vpack.c.bf16 %v898_v63, %v897_v4 }
 0x121   : > { %3540 = vmatprep.subr.bf16.mxu1 %v3539_v24 }
 0x122   : > { %3542 = vmatpush3.bf16.msra.mxu1 %v3539_v24  ;;  %v2137_v24 = vsel %vm2135_vm4, %v4109_v22, 0  ;;  %v3615_v22 = vadd.f32 %v4086_v9, %v4082_v6 }
 0x123   : > { %3544 = vmatprep.subr.bf16.mxu1 %v4289_v30 }
 0x125   : > { %3396 = vmatmul.mubr.msk.f32.vlgmr.msra.gmra.mrb[4].mxu1 %vm773_vm0, %v900_v48 }
 0x126   : > { %3546 = vmatpush3.bf16.msra.mxu1 %v4289_v30  ;;  %3398 = vmatprep.mubr.msk.f32.mxu1 %vm773_vm0, %v901_v56 }
 0x127   : > { %3548 = vmatprep.subr.bf16.mxu1 %v4304_v0 }
 0x129   : > { %3399 = vmatmul.mubr.msk.f32.gmra.mrb[6].mxu1 %vm773_vm0, %v902_v34 }
 0x12a   : > { %3550 = vmatpush3.bf16.msra.mxu1 %v4304_v0  ;;  %3409 = vmatprep.mubr.msk.f32.mxu1 %vm773_vm0, %v1024_v36 }
 0x12b   : > { %3552 = vmatprep.subr.bf16.mxu1 %v3922_v8 }
 0x12d   : > { %3410 = vmatmul.mubr.msk.f32.vlgmr.msra.gmra.mrb[4].mxu1 %vm773_vm0, %v1025_v39  ;;  %v1298_v39 = vld [vmem:[%s4975_s12] sm:$0xff] }
 0x12e   : > { %3554 = vmatpush3.bf16.msra.mxu1 %v3922_v8  ;;  %3412 = vmatprep.mubr.msk.f32.mxu1 %vm773_vm0, %v1026_v43  ;;  %v1162_v8 = vld [vmem:[%s4973_s10 + $0x8] sm:$0xff]  ;;  %v3617_v43 = vadd.f32 %v4084_v7, %v4080_v5 }
 0x12f   : > { %3556 = vmatprep.subr.bf16.mxu1 %v3940_v15 }
 0x131   : > { %3413 = vmatmul.mubr.msk.f32.gmra.mrb[6].mxu1 %vm773_vm0, %v1027_v45 }
 0x132   : > { %3558 = vmatpush3.bf16.msra.mxu1 %v3940_v15  ;;  %3423 = vmatprep.mubr.msk.f32.mxu1 %vm773_vm0, %v1161_v46 }
 0x135   : > { %3424 = vmatmul.mubr.msk.f32.vlgmr.msra.gmra.mrb[4].mxu1 %vm773_vm0, %v1162_v8 }
 0x136   : > { %3426 = vmatprep.mubr.msk.f32.mxu1 %vm773_vm0, %v1163_v50  ;;  %v4350_v1 = vpop.permute.xlu1 %2257 }
 0x138   : > { %v2219_v52 = vpop.permute.xlu0 %2218 }
 0x139   : > { %3427 = vmatmul.mubr.msk.f32.gmra.mrb[6].mxu1 %vm773_vm0, %v1164_v27  ;;  %v3619_v27 = vadd.f32 %v4094_v13, %v4090_v11  ;;  %v1300_v11 = vld [vmem:[%s4975_s12 + $0x10] sm:$0xff]  ;;  %v1451_v13 = vld [vmem:[%s4977_s14] sm:$0xff] }
 0x13a   : > { %v4353_v15 = vpop.permute.xlu1 %2259  ;;  %3437 = vmatprep.mubr.msk.f32.mxu1 %vm773_vm0, %v1298_v39 }
 0x13c   : > { %v4357_v62 = vpop.permute.xlu0 %2261 }
 0x13e   : > { %v4355_v58 = vpop.permute.xlu1 %2222 }
 0x140   : > { %v2221_v4 = vpop.permute.xlu0 %2220 }
 0x141   : > { %v2225_v2 = vsel %vm5035_vm13, %v2219_v52, %v2221_v4 }
 0x142   : > { %v2234_v63 = vpop.permute.xlu1 %2233  ;;  %v2323_v48 = vsel %vm2320_vm3, %v2137_v24, %v2225_v2 }
 0x146   : > { %v4359_v61 = vpop.permute.xlu1 %2252 }
 0x14a   : > { %v4366_v32 = vpop.permute.xlu1 %2287 }
 0x14e   : > { %v2236_v56 = vpop.permute.xlu1 %2235 }
 0x14f   : > { %v2240_v34 = vsel %vm5034_vm2, %v2234_v63, %v2236_v56  ;;  %v3621_v63 = vadd.f32 %v4092_v12, %v4088_v10  ;;  %v1299_v10 = vld [vmem:[%s4975_s12 + $0x8] sm:$0xff]  ;;  %v1301_v12 = vld [vmem:[%s4975_s12 + $0x18] sm:$0xff] }
 0x150   : > { %v2329_v36 = vsel %vm2327_vm14, %v2323_v48, %v2240_v34 }
 0x208   : > { %v3425_v45 = vpop.f32.mrb[4].mxu1 }
 0x209   : > { %v3616_v46 = vadd.f32 %v3615_v22, %v3425_v45  ;;  %v1247_v8 = vpop.f32.mrb[5].mxu1  ;;  %v2138_v45 = vsel %vm2136_vm1, %v4115_v26, 0 }
 0x20a   : > { %v3618_v50 = vadd.f32 %v3617_v43, %v1247_v8 }
 0x20b   : > { %v1295_v52 = vadd.f32 %v3616_v46, %v4098_v16  ;;  %v1453_v16 = vld [vmem:[%s4977_s14 + $0x10] sm:$0xff]  ;;  %v2226_v46 = vsel %vm5035_vm13, %v2221_v4, %v4355_v58  ;;  %v4446_v58 = vld [vmem:[%s4981_s18] sm:$0xff]  ;;  %v4458_v4 = vld [vmem:[%s4982_s19 + $0x8] sm:$0xff] }
 0x20c   : > { %v1294_v24 = vadd.f32 %v3618_v50, %v4096_v14  ;;  %v3428_v2 = vpop.f32.mrb[6].mxu1  ;;  %v1452_v14 = vld [vmem:[%s4977_s14 + $0x8] sm:$0xff]  ;;  %v2326_v8 = vsel %vm2320_vm3, %v2138_v45, %v2226_v46 }
 0x20d   : > { %v3620_v48 = vadd.f32 %v3619_v27, %v3428_v2  ;;  %v1257_v6 = vpop.f32.mrb[7].mxu1 }
 0x20e   : > { %v3622_v9 = vadd.f32 %v3621_v63, %v1257_v6  ;;  %v3559_v34 = vpack.c.bf16 %v1295_v52, %v1294_v24 }
 0x20f   : > { %v1297_v5 = vadd.f32 %v3620_v48, %v4102_v18  ;;  %v2238_v18 = vpop.permute.xlu0 %2237  ;;  %v4478_v48 = vpop.permute.xlu1 %2303 }
 0x210   : > { %v1296_v7 = vadd.f32 %v3622_v9, %v4100_v17  ;;  %3560 = vmatprep.subr.bf16.mxu1 %v3559_v34  ;;  %v1454_v17 = vld [vmem:[%s4977_s14 + $0x18] sm:$0xff]  ;;  %v2241_v50 = vsel %vm5034_vm2, %v2236_v56, %v2238_v18  ;;  %v4467_v56 = vld [vmem:[%s4982_s19 + $0x10] sm:$0xff]  ;;  %vm2278_vm2 = vcmask 900096  }
 0x211   : > { %3562 = vmatpush3.bf16.msra.mxu1 %v3559_v34  ;;  %v2331_v24 = vsel %vm2327_vm14, %v2326_v8, %v2241_v50 }
 0x212   : > { %v3563_v39 = vpack.c.bf16 %v1297_v5, %v1296_v7 }
 0x213   : > { %v4480_v6 = vpop.permute.xlu1 %2274 }
 0x214   : > { %3564 = vmatprep.subr.bf16.mxu1 %v3563_v39 }
 0x215   : > { %3566 = vmatpush3.bf16.msra.mxu1 %v3563_v39 }
 0x216   : > { %3568 = vmatprep.subr.bf16.mxu1 %v4289_v30 }
 0x217   : > { %v4482_v9 = vpop.permute.xlu1 %2289 }
 0x218   : > { %3438 = vmatmul.mubr.msk.f32.vlgmr.msra.gmra.mrb[8].mxu1 %vm773_vm0, %v1299_v10 }
 0x219   : > { %3570 = vmatpush3.bf16.msra.mxu1 %v4289_v30  ;;  %3440 = vmatprep.mubr.msk.f32.mxu1 %vm773_vm0, %v1300_v11  ;;  %v2249_v30 = vpop.permute.xlu0 %2248 }
 0x21a   : > { %3572 = vmatprep.subr.bf16.mxu1 %v4304_v0 }
 0x21b   : > { %v4486_v5 = vpop.permute.xlu1 %2311 }
 0x21c   : > { %3441 = vmatmul.mubr.msk.f32.gmra.mrb[10].mxu1 %vm773_vm0, %v1301_v12 }
 0x21d   : > { %3574 = vmatpush3.bf16.msra.mxu1 %v4304_v0  ;;  %3451 = vmatprep.mubr.msk.f32.mxu1 %vm773_vm0, %v1451_v13  ;;  %v4419_v0 = vpop.permute.xlu0 %2276 }
 0x21f   : > { %v4490_v39 = vpop.permute.xlu1 %2315 }
 0x220   : > { %3452 = vmatmul.mubr.msk.f32.vlgmr.msra.gmra.mrb[12].mxu1 %vm773_vm0, %v1452_v14 }
 0x221   : > { %3454 = vmatprep.mubr.msk.f32.mxu1 %vm773_vm0, %v1453_v16  ;;  %v4421_v22 = vpop.permute.xlu0 %2272 }
 0x223   : > { %v1314_v11 = vpop.permute.xlu1 %1313 }
 0x224   : > { %3455 = vmatmul.mubr.msk.f32.gmra.mrb[14].mxu1 %vm773_vm0, %v1454_v17 }
 0x225   : > { %v4424_v43 = vpop.permute.xlu0 %2291  ;;  %3465 = vmatprep.mubr.msk.f32.mxu1 %vm773_vm0, %v4446_v58 }
 0x229   : > { %v2251_v27 = vpop.permute.xlu0 %2250 }
 0x22a   : > { %v2255_v52 = vsel %vm5033_vm5, %v2249_v30, %v2251_v27  ;;  %v2256_v63 = vsel %vm5033_vm5, %v2251_v27, %v4359_v61  ;;  %v4453_v61 = vld [vmem:[%s4982_s19] sm:$0xff]  ;;  %v1324_v30 = vpop.permute.xlu1 %1323  ;;  %vm2263_vm5 = vcmask 908288  }
 0x22b   : > { %v4438_v2 = vsel %vm2332_vm10, %v2331_v24, %v2256_v63  ;;  %v4441_v26 = vsel %vm2332_vm10, %v2329_v36, %v2255_v52  ;;  %3521 = vmatprep.mubr.msk.f32.mxu0 %vm773_vm0, %v4453_v61  ;;  %v4472_v36 = vld [vmem:[%s4982_s19 + $0x18] sm:$0xff] }
 0x22c   : > { %3522 = vmatmul.mubr.msk.f32.vlgmr.msra.gmra.mrb[4].mxu0 %vm773_vm0, %v4458_v4 }
 0x22d   : > { %3524 = vmatprep.mubr.msk.f32.mxu0 %vm773_vm0, %v4467_v56  ;;  %v4484_v34 = vpop.permute.xlu0 %2301 }
 0x230   : > { %3525 = vmatmul.mubr.msk.f32.gmra.mrb[6].mxu0 %vm773_vm0, %v4472_v36 }
 0x231   : > { %v4488_v7 = vpop.permute.xlu0 %2299 }
 0x235   : > { %v4492_v10 = vpop.permute.xlu0 %2313 }
 0x239   : > { %v1309_v12 = vpop.permute.xlu0 %1308 }
 0x23d   : > { %v1319_v8 = vpop.permute.xlu0 %1318 }
 0x2eb   : > { %v3439_v13 = vpop.f32.mrb[8].mxu1 }
 0x2ec   : > { %v4494_v14 = vadd.f32 %v3439_v13, %v1314_v11  ;;  %v1404_v16 = vpop.f32.mrb[9].mxu1 }
 0x2ed   : > { %v4496_v17 = vadd.f32 %v1404_v16, %v1309_v12 }
 0x2ee   : > { %v3235_v18 = vmul.f32 -1.442695, %v4494_v14 }
 0x2ef   : > { %v3234_v45 = vmul.f32 -1.442695, %v4496_v17  ;;  %v3442_v46 = vpop.f32.mrb[10].mxu1 }
 0x2f0   : > { %3684 = vpow2.f32 %v3235_v18  ;;  %v4500_v50 = vadd.f32 %v3442_v46, %v1324_v30  ;;  %v1414_v27 = vpop.f32.mrb[11].mxu1 }
 0x2f1   : > { %3686 = vpow2.f32 %v3234_v45  ;;  %v4502_v52 = vadd.f32 %v1414_v27, %v1319_v8 }
 0x2f2   : > { %v3237_v63 = vmul.f32 -1.442695, %v4500_v50 }
 0x2f3   : > { %v3236_v24 = vmul.f32 -1.442695, %v4502_v52  ;;  %v3453_v11 = vpop.f32.mrb[12].mxu1 }
 0x2f4   : > { %3688 = vpow2.f32 %v3237_v63  ;;  %v1563_v12 = vadd.f32 %v3453_v11, %v4196_v59  ;;  %v1557_v13 = vpop.f32.mrb[13].mxu1 }
 0x2f5   : > { %3690 = vpow2.f32 %v3236_v24  ;;  %v1558_v16 = vadd.f32 %v1557_v13, %v4186_v55  ;;  %v1577_v55 = vld [vmem:[%s4981_s18 + $0x8] sm:$0xff] }
 0x2f7   : > { %v3575_v3 = vpack.c.bf16 %v1563_v12, %v1558_v16  ;;  %v3456_v18 = vpop.f32.mrb[14].mxu1  ;;  %v2096_v12 = vstv %s3898_s26  ;;  %v2265_v16 = vsel %vm2263_vm5, %v4353_v15, %v4357_v62 }
 0x2f8   : > { %v1573_v30 = vadd.f32 %v3456_v18, %v4220_v31  ;;  %v1567_v46 = vpop.f32.mrb[15].mxu1  ;;  %vm4526_vm13 = vcmp.eq.s32.totalorder %v3971_v25, %v2096_v12  ;;  %v2280_v18 = vsel %vm2278_vm2, %v4480_v6, %v4419_v0  ;;  %v2264_v25 = vsel %vm2263_vm5, %v4350_v1, %v4353_v15 }
 0x2f9   : > { %v1568_v45 = vadd.f32 %v1567_v46, %v4212_v21  ;;  %3576 = vmatprep.subr.bf16.mxu1 %v3575_v3  ;;  %v1578_v21 = vld [vmem:[%s4981_s18 + $0x10] sm:$0xff]  ;;  %v2344_v0 = vsel %vm2320_vm3, %v2265_v16, %v2280_v18  ;;  %v2295_v46 = vsel %vm5038_vm12, %v4482_v9, %v4424_v43 }
 0x2fa   : > { %v3685_v8 = vpop.eup %3684  ;;  %3578 = vmatpush3.bf16.msra.mxu1 %v3575_v3 }
 0x2fb   : > { %v3687_v27 = vpop.eup %3686  ;;  %v1436_v38 = vadd.f32 1.0, %v3685_v8  ;;  %v3579_v42 = vpack.c.bf16 %v1573_v30, %v1568_v45  ;;  %v2279_v30 = vsel %vm2278_vm2, %v4421_v22, %v4480_v6  ;;  %v2348_v8 = vsel %vm2327_vm14, %v2344_v0, %v2295_v46 }
 0x2fc   : > { %v1435_v63 = vadd.f32 1.0, %v3687_v27  ;;  %v2341_v43 = vsel %vm2320_vm3, %v2264_v25, %v2279_v30  ;;  %v3664_v27 = vld [vmem:[%s4983_s20 + $0x8] sm:$0xff]  }
 0x2fd   : > { %3692 = vrcp.f32 %v1436_v38  ;;  %3580 = vmatprep.subr.bf16.mxu1 %v3579_v42  ;;  %v1579_v38 = vld [vmem:[%s4981_s18 + $0x18] sm:$0xff] }
 0x2fe   : > { %v3689_v59 = vpop.eup %3688  ;;  %3694 = vrcp.f32 %v1435_v63  ;;  %3582 = vmatpush3.bf16.msra.mxu1 %v3579_v42  ;;  %v2090_v63 = vld [vmem:[%s4984_s21 + $0x8] sm:$0xff] }
 0x2ff   : > { %v3691_v31 = vpop.eup %3690  ;;  %v1438_v24 = vadd.f32 1.0, %v3689_v59  ;;  %3584 = vmatprep.subr.bf16.mxu1 %v3575_v3  ;;  %v3523_v59 = vpop.f32.mrb[4].mxu0 }
 0x300   : > { %v1437_v11 = vadd.f32 1.0, %v3691_v31 }
 0x301   : > { %3696 = vrcp.f32 %v1438_v24  ;;  %3466 = vmatmul.mubr.msk.f32.vlgmr.msra.gmra.mrb[16].mxu1 %vm773_vm0, %v1577_v55 }
 0x302   : > { %3698 = vrcp.f32 %v1437_v11  ;;  %3586 = vmatpush3.bf16.msra.mxu1 %v3575_v3  ;;  %3468 = vmatprep.mubr.msk.f32.mxu1 %vm773_vm0, %v1578_v21 }
 0x303   : > { %3588 = vmatprep.subr.bf16.mxu1 %v3579_v42 }
 0x305   : > { %3469 = vmatmul.mubr.msk.f32.gmra.mrb[18].mxu1 %vm773_vm0, %v1579_v38 }
 0x306   : > { %3590 = vmatpush3.bf16.msra.mxu1 %v3579_v42  ;;  %3479 = vmatprep.mubr.msk.f32.mxu1 %vm773_vm0, %v4453_v61 }
 0x307   : > { %v3693_v13 = vpop.eup %3692  ;;  %3600 = vmatprep.subr.bf16.mxu1 %v4273_v47 }
 0x308   : > { %v3695_v42 = vpop.eup %3694  ;;  %v1448_v61 = vmul.f32 %v3693_v13, %v4494_v14 }
 0x309   : > { %v1447_v62 = vmul.f32 %v3695_v42, %v4496_v17  ;;  %3480 = vmatmul.mubr.msk.f32.vlgmr.msra.gmra.mrb[20].mxu1 %vm773_vm0, %v4458_v4  ;;  %v2307_v17 = vsel %vm2305_vm6, %v4484_v34, %v4478_v48 }
 0x30a   : > { %3602 = vmatpush3.bf16.msra.mxu1 %v4273_v47  ;;  %3482 = vmatprep.mubr.msk.f32.mxu1 %vm773_vm0, %v4467_v56  ;;  %v2454_v1 = vsel %vm4526_vm13, %v1448_v61, 0.0  ;;  %v2294_v47 = vsel %vm5038_vm12, %v4366_v32, %v4482_v9  ;;  %vm2317_vm12 = vcmask 769024  }
 0x30b   : > { %v3697_v15 = vpop.eup %3696  ;;  %3604 = vmatprep.subr.bf16.mxu1 %v4279_v23  ;;  %v2461_v22 = vsel %vm2157_vm11, %v2454_v1, 0.0  ;;  %v2453_v4 = vsel %vm4526_vm13, %v1447_v62, 0.0  ;;  %v2346_v9 = vsel %vm2327_vm14, %v2341_v43, %v2294_v47  ;;  %vm5073_vm14 = vcmp.ne.s16.totalorder %v4181_v51, 0 }
 0x30c   : > { %v3699_v6 = vpop.eup %3698  ;;  %v1450_v56 = vmul.f32 %v3697_v15, %v4500_v50  ;;  %2462 = vadd.xlane.f32.xlu1 %v2461_v22  ;;  %v2458_v14 = vsel %vm2157_vm11, %v2453_v4, 0.0  ;;  %v2353_v50 = vsel %vm2332_vm10, %v2348_v8, %v2307_v17 }
 0x30d   : > { %v1449_v45 = vmul.f32 %v3699_v6, %v4502_v52  ;;  %3483 = vmatmul.mubr.msk.f32.gmra.mrb[22].mxu1 %vm773_vm0, %v4472_v36  ;;  %2459 = vadd.xlane.f32.xlu0 %v2458_v14  ;;  %v2306_v36 = vsel %vm2305_vm6, %v4488_v7, %v4484_v34  ;;  %v2319_v34 = vsel %vm2317_vm12, %v4492_v10, %v4490_v39  ;;  %v2091_v39 = vld [vmem:[%s4984_s21 + $0x10] sm:$0xff] }
 0x30e   : > { %3606 = vmatpush3.bf16.msra.mxu1 %v4279_v23  ;;  %3507 = vmatprep.mubr.msk.f32.mxu1 %vm773_vm0, %v4446_v58  ;;  %v2456_v32 = vsel %vm4526_vm13, %v1450_v56, 0.0  ;;  %v2318_v58 = vsel %vm2317_vm12, %v4486_v5, %v4492_v10  ;;  %v3663_v5 = vld [vmem:[%s4983_s20] sm:$0xff]   ;;  %v2092_v10 = vld [vmem:[%s4984_s21 + $0x18] sm:$0xff] }
 0x30f   : > { %2398 = vmatprep.subr.bf16.mxu1 %v4438_v2  ;;  %v2467_v48 = vsel %vm2157_vm11, %v2456_v32, 0.0  ;;  %v2455_v23 = vsel %vm4526_vm13, %v1449_v45, 0.0  ;;  %v2350_v2 = vsel %vm2332_vm10, %v2346_v9, %v2306_v36  ;;  %v2393_v52 = vsel %vm2320_vm3, %v2318_v58, 0 }
 0x310   : > { %v2464_v7 = vsel %vm2157_vm11, %v2455_v23, 0.0  ;;  %vm2385_vm10 = vcmask 293888  }
 0x311   : > { %3508 = vmatmul.mubr.msk.f32.vlgmr.msra.gmra.mrb[24].mxu1 %vm773_vm0, %v1577_v55  ;;  %2468 = vadd.xlane.f32.xlu0 %v2467_v48  ;;  %v2054_v55 = vpop.f32.mrb[5].mxu0 }
 0x312   : > { %2399 = vmatpush1.bf16.msra.mxu1 %v4441_v26  ;;  %3510 = vmatprep.mubr.msk.f32.mxu1 %vm773_vm0, %v1578_v21  ;;  %v5061_v26 = vmov 0   ;;  %v4618_v31 = vpop.f32.mrb[6].mxu0  ;;  %v2662_v4 = vsel %vm4526_vm13, %v2054_v55, 0.0 }
 0x313   : > { %2400 = vmatprep.subr.bf16.mxu1 %v2353_v50  ;;  %v2064_v24 = vpop.f32.mrb[7].mxu0  ;;  %v2666_v14 = vsel %vm2157_vm11, %v2662_v4, 0.0 }
 0x314   : > { %v2664_v50 = vsel %vm4526_vm13, %v2064_v24, 0.0 }
 0x315   : > { %2465 = vadd.xlane.f32.xlu0 %v2464_v7  ;;  %3511 = vmatmul.mubr.msk.f32.gmra.mrb[26].mxu1 %vm773_vm0, %v1579_v38  ;;  %v2672_v58 = vsel %vm2157_vm11, %v2664_v50, 0.0 }
 0x316   : > { %2401 = vmatpush1.bf16.msra.mxu1 %v2350_v2  ;;  %2430 = vmatprep.mubr.bf16.mxu1 %v5061_v26 }
 0x317   : > { %3264 = vmatprep.subr.msk.bf16.mxu1 %vm2320_vm3, %v2319_v34  ;;  %vm5077_vm3 = vcmp.ne.s16.totalorder %v4147_v37, 0 }
 0x31a   : > { %2403 = vmatpush1.bf16.msra.mxu1 %v2393_v52 }
 0x31d   : > { %3265 = vmatmul.mubr.msk.bf16.vlgmr.msra.gmra.mrb[28].mxu1 %vm2385_vm10, %v3663_v5  ;;  %2367 = vperm.xlu1 %3661, %v2091_v39  }
 0x31e   : > { %2440 = vmatprep.mubr.bf16.mxu1 %v5061_v26 }
 0x321   : > { %2372 = vperm.xlu1 %3661, %v2092_v10  }
 0x325   : > { %3266 = vmatmul.mubr.msk.bf16.gmra.mrb[32].mxu1 %vm2385_vm10, %v3664_v27  ;;  %vm5079_vm10 = vmmov %vm5073_vm14 }
 0x32b   : > { %2362 = vperm.xlu0 %3660, %v2090_v63   ;;  %v2663_v63 = vsel %vm4526_vm13, %v3523_v59, 0.0 }
 0x3d4   : > { %v3467_v21 = vpop.f32.mrb[16].mxu1 }
 0x3d5   : > { %v2535_v11 = vsel %vm4526_vm13, %v3467_v21, 0.0  ;;  %v1658_v38 = vpop.f32.mrb[17].mxu1  ;;  %v2669_v21 = vsel %vm2157_vm11, %v2663_v63, 0.0 }
 0x3d6   : > { %v2534_v12 = vsel %vm4526_vm13, %v1658_v38, 0.0  ;;  %v2541_v13 = vsel %vm2157_vm11, %v2535_v11, 0.0 }
 0x3d7   : > { %2542 = vadd.xlane.f32.xlu1 %v2541_v13  ;;  %v2538_v16 = vsel %vm2157_vm11, %v2534_v12, 0.0 }
 0x3d8   : > { %v3470_v18 = vpop.f32.mrb[18].mxu1  ;;  %2539 = vadd.xlane.f32.xlu0 %v2538_v16  ;;  %v2665_v16 = vsel %vm4526_vm13, %v4618_v31, 0.0 }
 0x3d9   : > { %v1668_v42 = vpop.f32.mrb[19].mxu1  ;;  %v2537_v30 = vsel %vm4526_vm13, %v3470_v18, 0.0  ;;  %v2675_v59 = vsel %vm2157_vm11, %v2665_v16, 0.0 }
 0x3da   : > { %v2536_v61 = vsel %vm4526_vm13, %v1668_v42, 0.0  ;;  %v2547_v46 = vsel %vm2157_vm11, %v2537_v30, 0.0  ;;  %v2460_v42 = vpop.xlane.xlu0 %2459 }
 0x3db   : > { %v2544_v25 = vsel %vm2157_vm11, %v2536_v61, 0.0 }
 0x3dc   : > { %v3481_v62 = vpop.f32.mrb[20].mxu1  ;;  %2545 = vadd.xlane.f32.xlu1 %v2544_v25  ;;  %v2358_v25 = vpop.permute.xlu1 %2357 }
 0x3dd   : > { %v1759_v0 = vpop.f32.mrb[21].mxu1  ;;  %v2637_v10 = vsel %vm4526_vm13, %v3481_v62, 0.0 }
 0x3de   : > { %v2636_v1 = vsel %vm4526_vm13, %v1759_v0, 0.0  ;;  %v2643_v55 = vsel %vm2157_vm11, %v2637_v10, 0.0  ;;  %v2469_v61 = vpop.xlane.xlu0 %2468 }
 0x3df   : > { %v2640_v6 = vsel %vm2157_vm11, %v2636_v1, 0.0 }
 0x3e0   : > { %v3484_v15 = vpop.f32.mrb[22].mxu1  ;;  %2548 = vadd.xlane.f32.xlu1 %v2547_v46  ;;  %v2463_v62 = vpop.xlane.xlu1 %2462 }
 0x3e1   : > { %v1769_v22 = vpop.f32.mrb[23].mxu1  ;;  %v2639_v12 = vsel %vm4526_vm13, %v3484_v15, 0.0 }
 0x3e2   : > { %v2638_v8 = vsel %vm4526_vm13, %v1769_v22, 0.0  ;;  %v2649_v18 = vsel %vm2157_vm11, %v2639_v12, 0.0  ;;  %v2466_v30 = vpop.xlane.xlu0 %2465 }
 0x3e3   : > { %v2646_v23 = vsel %vm2157_vm11, %v2638_v8, 0.0 }
 0x3e4   : > { %v3509_v43 = vpop.f32.mrb[24].mxu1  ;;  %2641 = vadd.xlane.f32.xlu1 %v2640_v6  ;;  %v2368_v22 = vpop.permute.xlu1 %2367 }
 0x3e5   : > { %v2577_v47 = vsel %vm4526_vm13, %v3509_v43, 0.0  ;;  %v1969_v56 = vpop.f32.mrb[25].mxu1 }
 0x3e6   : > { %v2583_v17 = vsel %vm2157_vm11, %v2577_v47, 0.0  ;;  %v2576_v45 = vsel %vm4526_vm13, %v1969_v56, 0.0  ;;  %v2363_v0 = vpop.permute.xlu0 %2362 }
 0x3e7   : > { %2584 = vadd.xlane.f32.xlu0 %v2583_v17  ;;  %v2580_v36 = vsel %vm2157_vm11, %v2576_v45, 0.0 }
 0x3e8   : > { %2667 = vadd.xlane.f32.xlu1 %v2666_v14  ;;  %v3512_v32 = vpop.f32.mrb[26].mxu1  ;;  %v2373_v17 = vpop.permute.xlu1 %2372 }
 0x3e9   : > { %v1979_v48 = vpop.f32.mrb[27].mxu1  ;;  %v2579_v34 = vsel %vm4526_vm13, %v3512_v32, 0.0 }
 0x3ea   : > { %v2578_v9 = vsel %vm4526_vm13, %v1979_v48, 0.0  ;;  %v2589_v39 = vsel %vm2157_vm11, %v2579_v34, 0.0 }
 0x3eb   : > { %2581 = vadd.xlane.f32.xlu0 %v2580_v36  ;;  %v2586_v2 = vsel %vm2157_vm11, %v2578_v9, 0.0  ;;  %vm5070_vm11 = vcmp.ne.s16.totalorder %v4124_v29, 0 }
 0x3ec   : > { %2647 = vadd.xlane.f32.xlu1 %v2646_v23  ;;  %vm5071_vm13 = vmmov %vm5070_vm11 }
 0x3ef   : > { %2587 = vadd.xlane.f32.xlu0 %v2586_v2 }
 0x3f0   : > { %v2432_v7 = vpop.f32.mrb[28].mxu1  ;;  %2673 = vadd.xlane.f32.xlu1 %v2672_v58 }
 0x3f1   : > { %v2434_v52 = vpop.f32.mrb[29].mxu1  ;;  %v2433_v46 = vadd.f32 %v2432_v7, %v2358_v25 }
 0x3f2   : > { %v2436_v5 = vpop.f32.mrb[30].mxu1  ;;  %v2435_v4 = vadd.f32 %v2434_v52, %v2358_v25 }
 0x3f3   : > { %v2438_v27 = vpop.f32.mrb[31].mxu1  ;;  %2590 = vadd.xlane.f32.xlu0 %v2589_v39  ;;  %v2437_v1 = vadd.f32 %v2436_v5, %v2363_v0  ;;  %v2470_v6 = vadd.f32 %v2460_v42, %v2433_v46 }
 0x3f4   : > { %v2439_v15 = vadd.f32 %v2438_v27, %v2363_v0  ;;  %v2471_v47 = vadd.f32 %v2460_v42, %v2435_v4 }
 0x3f5   : > { %v2472_v3 = vadd.f32 %v2463_v62, %v2437_v1  ;;  %v3267_v14 = vmul.f32 -1.442695, %v2470_v6 }
 0x3f6   : > { %v2473_v31 = vadd.f32 %v2463_v62, %v2439_v15  ;;  %v3268_v9 = vmul.f32 -1.442695, %v2471_v47 }
 0x3f7   : > { %2644 = vadd.xlane.f32.xlu0 %v2643_v55  ;;  %v3269_v45 = vmul.f32 -1.442695, %v2472_v3  ;;  %3700 = vpow2.f32 %v3267_v14 }
 0x3f8   : > { %v2442_v24 = vpop.f32.mrb[32].mxu1  ;;  %v3270_v8 = vmul.f32 -1.442695, %v2473_v31 }
 0x3f9   : > { %v2444_v11 = vpop.f32.mrb[33].mxu1  ;;  %v2443_v43 = vadd.f32 %v2442_v24, %v2368_v22  ;;  %3702 = vpow2.f32 %v3269_v45 }
 0x3fa   : > { %v2446_v38 = vpop.f32.mrb[34].mxu1  ;;  %v2445_v56 = vadd.f32 %v2444_v11, %v2368_v22  ;;  %3704 = vpow2.f32 %v3270_v8 }
 0x3fb   : > { %v2448_v13 = vpop.f32.mrb[35].mxu1  ;;  %2670 = vadd.xlane.f32.xlu0 %v2669_v21  ;;  %v2474_v32 = vadd.f32 %v2466_v30, %v2443_v43  ;;  %v2447_v48 = vadd.f32 %v2446_v38, %v2373_v17  ;;  %3706 = vpow2.f32 %v3268_v9 }
 0x3fc   : > { %v2475_v36 = vadd.f32 %v2466_v30, %v2445_v56  ;;  %v2449_v50 = vadd.f32 %v2448_v13, %v2373_v17 }
 0x3fd   : > { %v3271_v23 = vmul.f32 -1.442695, %v2474_v32  ;;  %v2476_v2 = vadd.f32 %v2469_v61, %v2447_v48 }
 0x3fe   : > { %v3272_v58 = vmul.f32 -1.442695, %v2475_v36  ;;  %v2477_v34 = vadd.f32 %v2469_v61, %v2449_v50 }
 0x3ff   : > { %2650 = vadd.xlane.f32.xlu0 %v2649_v18  ;;  %3708 = vpow2.f32 %v3271_v23  ;;  %v3273_v7 = vmul.f32 -1.442695, %v2476_v2 }
 0x400   : > { %3710 = vpow2.f32 %v3272_v58  ;;  %v3274_v52 = vmul.f32 -1.442695, %v2477_v34 }
 0x401   : > { %v3701_v5 = vpop.eup %3700  ;;  %3712 = vpow2.f32 %v3273_v7 }
 0x402   : > { %3714 = vpow2.f32 %v3274_v52  ;;  %v2502_v63 = vadd.f32 1.0, %v3701_v5 }
 0x403   : > { %2676 = vadd.xlane.f32.xlu0 %v2675_v59  ;;  %v3703_v39 = vpop.eup %3702 }
 0x404   : > { %v3705_v10 = vpop.eup %3704  ;;  %v2504_v55 = vadd.f32 1.0, %v3703_v39  ;;  %3716 = vrcp.f32 %v2502_v63 }
 0x405   : > { %v3707_v27 = vpop.eup %3706  ;;  %v2505_v24 = vadd.f32 1.0, %v3705_v10 }
 0x406   : > { %v2503_v11 = vadd.f32 1.0, %v3707_v27  ;;  %3718 = vrcp.f32 %v2504_v55 }
 0x407   : > { %3720 = vrcp.f32 %v2505_v24 }
 0x408   : > { %3722 = vrcp.f32 %v2503_v11 }
 0x409   : > { %v3709_v21 = vpop.eup %3708 }
 0x40a   : > { %v3711_v38 = vpop.eup %3710  ;;  %v2506_v12 = vadd.f32 1.0, %v3709_v21 }
 0x40b   : > { %v3713_v13 = vpop.eup %3712  ;;  %v2507_v16 = vadd.f32 1.0, %v3711_v38 }
 0x40c   : > { %v3715_v18 = vpop.eup %3714  ;;  %3724 = vrcp.f32 %v2506_v12  ;;  %v2508_v59 = vadd.f32 1.0, %v3713_v13 }
 0x40d   : > { %3726 = vrcp.f32 %v2507_v16  ;;  %v2509_v42 = vadd.f32 1.0, %v3715_v18 }
 0x40e   : > { %v3717_v61 = vpop.eup %3716  ;;  %3728 = vrcp.f32 %v2508_v59 }
 0x40f   : > { %3730 = vrcp.f32 %v2509_v42  ;;  %v4673_v15 = vmul.f32 %v3717_v61, %v2470_v6 }
 0x410   : > { %v3719_v25 = vpop.eup %3718 }
 0x411   : > { %v3721_v30 = vpop.eup %3720  ;;  %v4669_v0 = vmul.f32 %v3719_v25, %v2472_v3 }
 0x412   : > { %v3723_v62 = vpop.eup %3722  ;;  %v4671_v46 = vmul.f32 %v3721_v30, %v2473_v31 }
 0x413   : > { %v4675_v22 = vmul.f32 %v3723_v62, %v2471_v47 }
 0x416   : > { %v3725_v1 = vpop.eup %3724 }
 0x417   : > { %v3727_v43 = vpop.eup %3726  ;;  %v4681_v48 = vmul.f32 %v3725_v1, %v2474_v32 }
 0x418   : > { %v3729_v3 = vpop.eup %3728  ;;  %v4683_v31 = vmul.f32 %v3727_v43, %v2475_v36 }
 0x419   : > { %v3731_v47 = vpop.eup %3730  ;;  %v4687_v7 = vmul.f32 %v3729_v3, %v2476_v2 }
 0x41a   : > { %v4689_v52 = vmul.f32 %v3731_v47, %v2477_v34 }
 0x464   : > { %v2543_v4 = vpop.xlane.xlu1 %2542 }
 0x465   : > { %v2552_v56 = vmul.f32 %v2543_v4, %v4669_v0  ;;  %v2553_v14 = vmul.f32 %v2543_v4, %v4671_v46  ;;  %v2540_v17 = vpop.xlane.xlu0 %2539 }
 0x466   : > { %v2550_v45 = vmul.f32 %v2540_v17, %v4673_v15  ;;  %v2551_v8 = vmul.f32 %v2540_v17, %v4675_v22 }
 0x468   : > { %v2558_v6 = vadd.f32 %v2552_v56, %v2550_v45  ;;  %v2567_v9 = vadd.f32 %v2553_v14, %v2551_v8 }
 0x469   : > { %v2546_v50 = vpop.xlane.xlu1 %2545 }
 0x46a   : > { %v2554_v23 = vmul.f32 %v2546_v50, %v4681_v48  ;;  %v2555_v58 = vmul.f32 %v2546_v50, %v4683_v31 }
 0x46c   : > { %v2559_v5 = vadd.f32 %v2558_v6, %v2554_v23  ;;  %v2568_v39 = vadd.f32 %v2567_v9, %v2555_v58 }
 0x46d   : > { %v2549_v10 = vpop.xlane.xlu1 %2548 }
 0x46e   : > { %v2556_v32 = vmul.f32 %v2549_v10, %v4687_v7  ;;  %v2557_v36 = vmul.f32 %v2549_v10, %v4689_v52 }
 0x470   : > { %v2560_v27 = vadd.f32 %v2559_v5, %v2556_v32  ;;  %v2569_v63 = vadd.f32 %v2568_v39, %v2557_v36 }
 0x472   : > { %v2561_v38 = vrot.slane %v2560_v27, 4  ;;  %v2570_v12 = vrot.slane %v2569_v63, 4 }
 0x474   : > { %v2585_v55 = vpop.xlane.xlu0 %2584  ;;  %v2562_v61 = vadd.f32 %v2561_v38, %v2560_v27  ;;  %v2571_v25 = vadd.f32 %v2570_v12, %v2569_v63 }
 0x475   : > { %v2594_v21 = vmul.f32 %v2585_v55, %v4669_v0  ;;  %v2595_v11 = vmul.f32 %v2585_v55, %v4671_v46 }
 0x476   : > { %v2563_v56 = vrot.slane %v2562_v61, 2  ;;  %v2572_v14 = vrot.slane %v2571_v25, 2 }
 0x478   : > { %v2582_v24 = vpop.xlane.xlu0 %2581  ;;  %v2564_v6 = vadd.f32 %v2563_v56, %v2562_v61  ;;  %v2573_v9 = vadd.f32 %v2572_v14, %v2571_v25 }
 0x479   : > { %v2592_v2 = vmul.f32 %v2582_v24, %v4673_v15  ;;  %v2593_v34 = vmul.f32 %v2582_v24, %v4675_v22 }
 0x47a   : > { %v2565_v5 = vrot.slane %v2564_v6, 1  ;;  %v2574_v39 = vrot.slane %v2573_v9, 1 }
 0x47b   : > { %v2600_v13 = vadd.f32 %v2594_v21, %v2592_v2  ;;  %v2609_v16 = vadd.f32 %v2595_v11, %v2593_v34 }
 0x47c   : > { %v2588_v18 = vpop.xlane.xlu0 %2587  ;;  %v2566_v63 = vadd.f32 %v2565_v5, %v2564_v6  ;;  %v2575_v55 = vadd.f32 %v2574_v39, %v2573_v9 }
 0x47d   : > { %v2596_v59 = vmul.f32 %v2588_v18, %v4681_v48  ;;  %v2597_v42 = vmul.f32 %v2588_v18, %v4683_v31 }
 0x47f   : > { %v2601_v30 = vadd.f32 %v2600_v13, %v2596_v59  ;;  %v2610_v62 = vadd.f32 %v2609_v16, %v2597_v42 }
 0x480   : > { %v2591_v1 = vpop.xlane.xlu0 %2590 }
 0x481   : > { %v2598_v4 = vmul.f32 %v2591_v1, %v4687_v7  ;;  %v2599_v43 = vmul.f32 %v2591_v1, %v4689_v52  ;;  %v2642_v1 = vpop.xlane.xlu1 %2641 }
 0x483   : > { %v2602_v17 = vadd.f32 %v2601_v30, %v2598_v4  ;;  %v2611_v45 = vadd.f32 %v2610_v62, %v2599_v43 }
 0x484   : > { %v2645_v61 = vpop.xlane.xlu0 %2644 }
 0x485   : > { %v2603_v8 = vrot.slane %v2602_v17, 4  ;;  %v2612_v3 = vrot.slane %v2611_v45, 4 }
 0x487   : > { %v2604_v47 = vadd.f32 %v2603_v8, %v2602_v17  ;;  %v2613_v50 = vadd.f32 %v2612_v3, %v2611_v45  ;;  %v2668_v17 = vpop.xlane.xlu1 %2667 }
 0x488   : > { %v2671_v14 = vpop.xlane.xlu0 %2670 }
 0x489   : > { %v2605_v23 = vrot.slane %v2604_v47, 2  ;;  %v2614_v58 = vrot.slane %v2613_v50, 2 }
 0x48b   : > { %v2606_v10 = vadd.f32 %v2605_v23, %v2604_v47  ;;  %v2615_v32 = vadd.f32 %v2614_v58, %v2613_v50  ;;  %v2648_v8 = vpop.xlane.xlu1 %2647 }
 0x48c   : > { %v2651_v45 = vpop.xlane.xlu0 %2650 }
 0x48d   : > { %v2607_v36 = vrot.slane %v2606_v10, 1  ;;  %v2616_v27 = vrot.slane %v2615_v32, 1 }
 0x48f   : > { %v2608_v24 = vadd.f32 %v2607_v36, %v2606_v10  ;;  %v2617_v21 = vadd.f32 %v2616_v27, %v2615_v32  ;;  %v2674_v36 = vpop.xlane.xlu1 %2673 }
 0x490   : > { %v2677_v6 = vpop.xlane.xlu0 %2676 }
 0x491   : > { %v2618_v11 = vmax.f32 %v2566_v63, %v2608_v24  ;;  %v2619_v2 = vmax.f32 %v2575_v55, %v2617_v21 }
 0x493   : > { %v2620_v34 = vsub.f32 %v2566_v63, %v2618_v11  ;;  %v2621_v38 = vsub.f32 %v2575_v55, %v2619_v2  ;;  %v2626_v12 = vsub.f32 %v2608_v24, %v2618_v11  ;;  %v2627_v13 = vsub.f32 %v2617_v21, %v2619_v2 }
 0x495   : > { %v2622_v16 = vmul.f32 1.442695, %v2620_v34  ;;  %v2624_v18 = vmul.f32 1.442695, %v2621_v38  ;;  %v2628_v59 = vmul.f32 1.442695, %v2626_v12 }
 0x496   : > { %v2630_v42 = vmul.f32 1.442695, %v2627_v13 }
 0x497   : > { %3732 = vpow2.f32 %v2622_v16 }
 0x498   : > { %3734 = vpow2.f32 %v2624_v18 }
 0x499   : > { %3736 = vpow2.f32 %v2628_v59 }
 0x49a   : > { %3738 = vpow2.f32 %v2630_v42 }
 0x4a1   : > { %v3733_v25 = vpop.eup %3732 }
 0x4a2   : > { %v3735_v30 = vpop.eup %3734 }
 0x4a3   : > { %v3737_v62 = vpop.eup %3736 }
 0x4a4   : > { %v3739_v4 = vpop.eup %3738  ;;  %v2632_v43 = vadd.f32 %v3737_v62, %v3733_v25 }
 0x4a5   : > { %v2633_v56 = vadd.f32 %v3739_v4, %v3735_v30 }
 0x4a6   : > { %3740 = vrcp.f32 %v2632_v43 }
 0x4a7   : > { %3742 = vrcp.f32 %v2633_v56 }
 0x4b0   : > { %v3741_v3 = vpop.eup %3740 }
 0x4b1   : > { %v3743_v9 = vpop.eup %3742  ;;  %v2652_v47 = vmul.f32 %v3741_v3, %v3733_v25  ;;  %v2678_v50 = vmul.f32 %v3741_v3, %v3737_v62 }
 0x4b2   : > { %v2653_v23 = vmul.f32 %v3743_v9, %v3735_v30  ;;  %v2679_v58 = vmul.f32 %v3743_v9, %v3739_v4 }
 0x4b3   : > { %v2656_v5 = vmul.f32 %v2652_v47, %v2645_v61  ;;  %v2682_v39 = vmul.f32 %v2678_v50, %v2671_v14  ;;  %v2660_v10 = vmul.f32 %v2652_v47, %v2651_v45  ;;  %v2686_v32 = vmul.f32 %v2678_v50, %v2677_v6 }
 0x4b4   : > { %v2657_v27 = vmul.f32 %v2653_v23, %v2645_v61  ;;  %v2683_v63 = vmul.f32 %v2679_v58, %v2671_v14  ;;  %v2661_v55 = vmul.f32 %v2653_v23, %v2651_v45  ;;  %v2687_v24 = vmul.f32 %v2679_v58, %v2677_v6 }
 0x4b5   : > { %v2690_v21 = vadd.f32 %v2682_v39, %v2656_v5  ;;  %v2694_v11 = vadd.f32 %v2686_v32, %v2660_v10  ;;  %v2658_v2 = vmul.f32 %v2652_v47, %v2648_v8  ;;  %v2659_v34 = vmul.f32 %v2653_v23, %v2648_v8 }
 0x4b6   : > { %v2691_v38 = vadd.f32 %v2683_v63, %v2657_v27  ;;  %v2695_v12 = vadd.f32 %v2687_v24, %v2661_v55  ;;  %v2684_v13 = vmul.f32 %v2678_v50, %v2674_v36  ;;  %v2685_v16 = vmul.f32 %v2679_v58, %v2674_v36 }
 0x4b7   : > { %v2698_v18 = vadd.f32 %v2690_v21, %v4669_v0  ;;  %v2702_v59 = vadd.f32 %v2694_v11, %v4687_v7  ;;  %v2655_v42 = vmul.f32 %v2653_v23, %v2642_v1  ;;  %v2681_v25 = vmul.f32 %v2679_v58, %v2668_v17 }
 0x4b8   : > { %v2699_v30 = vadd.f32 %v2691_v38, %v4671_v46  ;;  %v2703_v61 = vadd.f32 %v2695_v12, %v4689_v52  ;;  %v2692_v62 = vadd.f32 %v2684_v13, %v2658_v2  ;;  %v2693_v4 = vadd.f32 %v2685_v16, %v2659_v34  ;;  %v4866_v12 = vld [vmem:[%s4985_s22] sm:$0xff]  ;;  %v5091_v16 = vld [vmem:[#allocation4_spill] sm:$0xff] }
 0x4b9   : > { %v2689_v43 = vadd.f32 %v2681_v25, %v2655_v42  ;;  %v2654_v56 = vmul.f32 %v2652_v47, %v2642_v1  ;;  %v2680_v14 = vmul.f32 %v2678_v50, %v2668_v17  ;;  %v3276_v13 = vcombine.high %v4866_v12, %v4866_v12  ;;  %v2095_v25 = vld [vmem:[%s4986_s23] sm:$0xff] }
 0x4ba   : > { %v2700_v45 = vadd.f32 %v2692_v62, %v4681_v48  ;;  %v2701_v8 = vadd.f32 %v2693_v4, %v4683_v31 }
 0x4bb   : > { %v2697_v3 = vadd.f32 %v2689_v43, %v4675_v22  ;;  %v2688_v0 = vadd.f32 %v2680_v14, %v2654_v56  ;;  %3086 = vmatprep.mubr.bf16.mxu0 %v3276_v13 }
 0x4bc   : > { %v2706_v6 = vpack.c.bf16 %v2702_v59, %v2700_v45  ;;  %v2707_v7 = vpack.c.bf16 %v2703_v61, %v2701_v8 }
 0x4bd   : > { %v2705_v9 = vpack.c.bf16 %v2699_v30, %v2697_v3  ;;  %v2696_v23 = vadd.f32 %v2688_v0, %v4673_v15 }
 0x4bf   : > { %2714 = vrot.lane.b32.xlu0 %v2705_v9, %s5062_s0  ;;  %v2704_v46 = vpack.c.bf16 %v2698_v18, %v2696_v23 }
 0x4c1   : > { %2712 = vrot.lane.b32.xlu1 %v2704_v46, %s5062_s0 }
 0x4c5   : > { %2716 = vrot.lane.b32.xlu1 %v2706_v6, %s5062_s0 }
 0x4c9   : > { %2718 = vrot.lane.b32.xlu1 %v2707_v7, %s5062_s0 }
 0x531   : > { %v2715_v48 = vpop.permute.xlu0 %2714 }
 0x532   : > { %v4714_v31 = vsel %vm2110_vm7, %v2715_v48, 0 }
 0x533   : > { %v2713_v22 = vpop.permute.xlu1 %2712  ;;  %2782 = vrot.lane.b32.xlu1 %v4714_v31, %s5063_s25  ;;  %v2742_v10 = vsel %vm2161_vm9, %v4714_v31, 0  ;;  %v2748_v41 = vsel %vm5070_vm11, %v4714_v31, 0  ;;  %vm5083_vm11 = vcmp.ne.s16.totalorder %v4150_v40, 0 }
 0x534   : > { %v4719_v52 = vsel %vm2110_vm7, %v2713_v22, %v2715_v48  ;;  %v4722_v15 = vsel %vm2110_vm7, 0, %v2713_v22 }
 0x535   : > { %2780 = vrot.lane.b32.xlu0 %v4719_v52, %s5063_s25  ;;  %3283 = vmatprep.subr.msk.bf16.mxu0 %vm2136_vm1, %v4719_v52  ;;  %v2736_v1 = vsel %vm2135_vm4, %v4722_v15, 0  ;;  %v2741_v53 = vsel %vm2160_vm15, %v4719_v52, 0  ;;  %v2740_v54 = vsel %vm2159_vm8, %v4722_v15, 0  ;;  %v2753_v24 = vsel %vm5073_vm14, %v4719_v52, 0 }
 0x536   : > { %3055 = vmatpush1.bf16.msra.mxu0 %v2736_v1  ;;  %v2758_v37 = vsel %vm5083_vm11, %v4722_v15, 0 }
 0x537   : > { %v2717_v17 = vpop.permute.xlu1 %2716 }
 0x538   : > { %v4735_v47 = vsel %vm2110_vm7, 0, %v2717_v17 }
 0x539   : > { %2778 = vrot.lane.b32.xlu0 %v4722_v15, %s5063_s25  ;;  %v2738_v39 = vsel %vm2135_vm4, %v4735_v47, 0  ;;  %v2743_v63 = vsel %vm2159_vm8, %v4735_v47, 0  ;;  %vm5078_vm4 = vmmov %vm5077_vm3 }
 0x53b   : > { %v2719_v50 = vpop.permute.xlu1 %2718 }
 0x53c   : > { %v4738_v58 = vsel %vm2110_vm7, %v2717_v17, %v2719_v50  ;;  %v4741_v5 = vsel %vm2110_vm7, %v2719_v50, 0  ;;  %vm5067_vm7 = vcmp.ne.s16.totalorder %v4192_v57, 0  ;;  %v2754_v57 = vsel %vm5077_vm3, %v4714_v31, 0 }
 0x53d   : > { %2788 = vrot.lane.b32.xlu0 %v4741_v5, %s5063_s25  ;;  %2786 = vrot.lane.b32.xlu1 %v4738_v58, %s5063_s25  ;;  %v2745_v32 = vsel %vm2161_vm9, %v4741_v5, 0  ;;  %v2744_v36 = vsel %vm2160_vm15, %v4738_v58, 0  ;;  %v2747_v27 = vsel %vm5067_vm7, %v4719_v52, 0  ;;  %vm5069_vm9 = vcmp.ne.s16.totalorder %v4122_v28, 0  ;;  %vm5072_vm8 = vmmov %vm5067_vm7 }
 0x53e   : > { %3284 = vmatprep.subr.msk.bf16.mxu0 %vm2136_vm1, %v4738_v58  ;;  %v2746_v20 = vsel %vm5069_vm9, %v4722_v15, 0  ;;  %v2751_v19 = vsel %vm5071_vm13, %v4741_v5, 0  ;;  %v2750_v55 = vsel %vm5072_vm8, %v4738_v58, 0  ;;  %vm5074_vm15 = vmmov %vm5069_vm9  ;;  %vm5076_vm1 = vcmp.ne.s16.totalorder %v4136_v33, 0 }
 0x53f   : > { %3057 = vmatpush1.bf16.msra.mxu0 %v2738_v39  ;;  %v2749_v21 = vsel %vm5074_vm15, %v4735_v47, 0  ;;  %v2752_v29 = vsel %vm5076_vm1, %v4722_v15, 0  ;;  %v2757_v28 = vsel %vm5078_vm4, %v4741_v5, 0  ;;  %v2756_v11 = vsel %vm5079_vm10, %v4738_v58, 0  ;;  %vm5081_vm9 = vmmov %vm5076_vm1 }
 0x540   : > { %vm5080_vm7 = vcmp.ne.s16.totalorder %v4201_v60, 0  ;;  %v2755_v34 = vsel %vm5081_vm9, %v4735_v47, 0  ;;  %vm5084_vm13 = vcmp.ne.s16.totalorder %v4176_v49, 0  ;;  %vm5087_vm15 = vmmov %vm5083_vm11  ;;  %vm5088_vm1 = vcmp.ne.s16.totalorder %v4240_v44, 0 }
 0x541   : > { %2864 = vrot.lane.b32.xlu0 %v4719_v52, %s5064_s7  ;;  %2784 = vrot.lane.b32.xlu1 %v4735_v47, %s5063_s25  ;;  %v2759_v2 = vsel %vm5080_vm7, %v4719_v52, 0  ;;  %v2760_v51 = vsel %vm5084_vm13, %v4714_v31, 0  ;;  %vm5085_vm8 = vmmov %vm5084_vm13  ;;  %v2761_v49 = vsel %vm5087_vm15, %v4735_v47, 0  ;;  %v2765_v60 = vsel %vm5088_vm1, %v4719_v52, 0  ;;  %s5089_s25 = smov 94  }
 0x542   : > { %v2763_v33 = vsel %vm5085_vm8, %v4741_v5, 0  ;;  %vm5086_vm14 = vmmov %vm5080_vm7  ;;  %vm5090_vm3 = vcmp.ne.s16.totalorder %v4226_v35, 0  ;;  %vm5092_vm4 = vcmp.ne.s16.totalorder %v5091_v16, 0  ;;  %vm5096_vm11 = vcmask 1039360  }
 0x543   : > { %v2762_v38 = vsel %vm5086_vm14, %v4738_v58, 0  ;;  %v2764_v40 = vsel %vm5090_vm3, %v4722_v15, 0  ;;  %v2766_v18 = vsel %vm5092_vm4, %v4714_v31, 0  ;;  %vm5093_vm10 = vmmov %vm5092_vm4  ;;  %vm5100_vm15 = vcmask 1031168  }
 0x544   : > { %v2769_v59 = vsel %vm5093_vm10, %v4741_v5, 0  ;;  %vm5094_vm7 = vmmov %vm5088_vm1  ;;  %vm5104_vm10 = vcmask 916480  }
 0x545   : > { %2862 = vrot.lane.b32.xlu0 %v4722_v15, %s5064_s7  ;;  %2866 = vrot.lane.b32.xlu1 %v4714_v31, %s5064_s7  ;;  %v2768_v42 = vsel %vm5094_vm7, %v4738_v58, 0  ;;  %vm5095_vm9 = vmmov %vm5090_vm3 }
 0x546   : > { %v2767_v30 = vsel %vm5095_vm9, %v4735_v47, 0  ;;  %vm5097_vm13 = vmmov %vm5096_vm11 }
 0x547   : > { %vm5098_vm8 = vmmov %vm5096_vm11 }
 0x548   : > { %vm5099_vm14 = vmmov %vm5098_vm8 }
 0x549   : > { %2872 = vrot.lane.b32.xlu0 %v4741_v5, %s5064_s7  ;;  %2870 = vrot.lane.b32.xlu1 %v4738_v58, %s5064_s7  ;;  %vm5101_vm1 = vmmov %vm5100_vm15 }
 0x54a   : > { %vm5102_vm3 = vmmov %vm5101_vm1 }
 0x54b   : > { %vm5103_vm4 = vmmov %vm5101_vm1 }
 0x54c   : > { %vm5105_vm7 = vmmov %vm5104_vm10 }
 0x54d   : > { %2948 = vrot.lane.b32.xlu0 %v4719_v52, %s5065_s30  ;;  %2868 = vrot.lane.b32.xlu1 %v4735_v47, %s5064_s7  ;;  %vm5106_vm9 = vmmov %vm5105_vm7 }
 0x551   : > { %2810 = vrot.lane.b32.xlu0 %v2741_v53, %s5066_s3  ;;  %2950 = vrot.lane.b32.xlu1 %v4714_v31, %s5065_s30 }
 0x555   : > { %2808 = vrot.lane.b32.xlu0 %v2740_v54, %s5066_s3  ;;  %2812 = vrot.lane.b32.xlu1 %v2742_v10, %s5066_s3 }
 0x559   : > { %2818 = vrot.lane.b32.xlu0 %v2745_v32, %s5066_s3  ;;  %2816 = vrot.lane.b32.xlu1 %v2744_v36, %s5066_s3 }
 0x55d   : > { %2840 = vrot.lane.b32.xlu0 %v2747_v27, %s5068_s29  ;;  %2814 = vrot.lane.b32.xlu1 %v2743_v63, %s5066_s3 }
 0x561   : > { %2838 = vrot.lane.b32.xlu0 %v2746_v20, %s5068_s29  ;;  %2842 = vrot.lane.b32.xlu1 %v2748_v41, %s5068_s29 }
 0x565   : > { %2848 = vrot.lane.b32.xlu0 %v2751_v19, %s5068_s29  ;;  %2846 = vrot.lane.b32.xlu1 %v2750_v55, %s5068_s29 }
 0x569   : > { %2894 = vrot.lane.b32.xlu0 %v2753_v24, %s5075_s2  ;;  %2844 = vrot.lane.b32.xlu1 %v2749_v21, %s5068_s29 }
 0x56d   : > { %2892 = vrot.lane.b32.xlu0 %v2752_v29, %s5075_s2  ;;  %2896 = vrot.lane.b32.xlu1 %v2754_v57, %s5075_s2 }
 0x571   : > { %2902 = vrot.lane.b32.xlu0 %v2757_v28, %s5075_s2  ;;  %2900 = vrot.lane.b32.xlu1 %v2756_v11, %s5075_s2 }
 0x575   : > { %2924 = vrot.lane.b32.xlu0 %v2759_v2, %s5082_s4  ;;  %2898 = vrot.lane.b32.xlu1 %v2755_v34, %s5075_s2  ;;  %s3282_s2 = sshll.u32 %s4010_s27, 4 }
 0x576   : > { %s737_s0 = scalar_lea.vmem %s4987_s24, %s3282_s2 }
 0x579   : > { %2922 = vrot.lane.b32.xlu0 %v2758_v37, %s5082_s4  ;;  %2926 = vrot.lane.b32.xlu1 %v2760_v51, %s5082_s4 }
 0x57d   : > { %2932 = vrot.lane.b32.xlu0 %v2763_v33, %s5082_s4  ;;  %2930 = vrot.lane.b32.xlu1 %v2762_v38, %s5082_s4 }
 0x581   : > { %2946 = vrot.lane.b32.xlu0 %v4722_v15, %s5065_s30  ;;  %2928 = vrot.lane.b32.xlu1 %v2761_v49, %s5082_s4 }
 0x585   : > { %2956 = vrot.lane.b32.xlu0 %v4741_v5, %s5065_s30  ;;  %2954 = vrot.lane.b32.xlu1 %v4738_v58, %s5065_s30 }
 0x589   : > { %2978 = vrot.lane.b32.xlu0 %v2765_v60, %s5089_s25  ;;  %2952 = vrot.lane.b32.xlu1 %v4735_v47, %s5065_s30 }
 0x58d   : > { %2976 = vrot.lane.b32.xlu0 %v2764_v40, %s5089_s25  ;;  %2980 = vrot.lane.b32.xlu1 %v2766_v18, %s5089_s25 }
 0x591   : > { %2986 = vrot.lane.b32.xlu0 %v2769_v59, %s5089_s25  ;;  %2984 = vrot.lane.b32.xlu1 %v2768_v42, %s5089_s25 }
 0x595   : > { %3038 = vperm.xlu0 %3660, %v2095_v25   ;;  %2982 = vrot.lane.b32.xlu1 %v2767_v30, %s5089_s25 }
 0x5a5   : > { %v2783_v61 = vpop.permute.xlu1 %2782 }
 0x5a7   : > { %v2781_v62 = vpop.permute.xlu0 %2780 }
 0x5a8   : > { %v2791_v44 = vsel %vm5096_vm11, %v2781_v62, %v2783_v61  ;;  %vm5107_vm11 = vmmov %vm5105_vm7 }
 0x5a9   : > { %3058 = vmatprep.subr.bf16.mxu0 %v2791_v44 }
 0x5ab   : > { %v2779_v4 = vpop.permute.xlu0 %2778 }
 0x5ac   : > { %v2790_v43 = vsel %vm5097_vm13, %v2779_v4, %v2781_v62  ;;  %vm5108_vm13 = vcmask 785408  }
 0x5ad   : > { %3059 = vmatpush1.bf16.msra.mxu0 %v2790_v43 }
 0x5af   : > { %v2789_v56 = vpop.permute.xlu0 %2788  ;;  %v2787_v14 = vpop.permute.xlu1 %2786 }
 0x5b0   : > { %v2793_v45 = vsel %vm5098_vm8, %v2787_v14, %v2789_v56 }
 0x5b1   : > { %3060 = vmatprep.subr.bf16.mxu0 %v2793_v45 }
 0x5b3   : > { %v2865_v8 = vpop.permute.xlu0 %2864  ;;  %v2785_v35 = vpop.permute.xlu1 %2784 }
 0x5b4   : > { %v2792_v3 = vsel %vm5099_vm14, %v2785_v35, %v2787_v14  ;;  %v3275_v35 = vcombine.low %v4866_v12, %v4866_v12 }
 0x5b5   : > { %3061 = vmatpush1.bf16.msra.mxu0 %v2792_v3 }
 0x5b7   : > { %v2863_v0 = vpop.permute.xlu0 %2862  ;;  %v2867_v6 = vpop.permute.xlu1 %2866 }
 0x5b8   : > { %v2875_v55 = vsel %vm2263_vm5, %v2865_v8, %v2867_v6  ;;  %v2874_v29 = vsel %vm2263_vm5, %v2863_v0, %v2865_v8 }
 0x5bb   : > { %v2873_v7 = vpop.permute.xlu0 %2872  ;;  %v2871_v9 = vpop.permute.xlu1 %2870 }
 0x5bc   : > { %v2877_v57 = vsel %vm2263_vm5, %v2871_v9, %v2873_v7 }
 0x5bf   : > { %v4913_v23 = vpop.permute.xlu0 %2948  ;;  %v2869_v46 = vpop.permute.xlu1 %2868 }
 0x5c0   : > { %v2876_v2 = vsel %vm2263_vm5, %v2869_v46, %v2871_v9  ;;  %vm5109_vm5 = vmmov %vm5108_vm13 }
 0x5c1   : > { %vm5110_vm8 = vmmov %vm5109_vm5 }
 0x5c2   : > { %vm5111_vm14 = vmmov %vm5109_vm5 }
 0x5c3   : > { %v2811_v48 = vpop.permute.xlu0 %2810  ;;  %v4915_v31 = vpop.permute.xlu1 %2950 }
 0x5c4   : > { %v2959_v62 = vsel %vm2305_vm6, %v4913_v23, %v4915_v31  ;;  %v3667_v31 = vld [vmem:[%s4985_s22 + $0x8] ss:$0 sps:$4 sm:$0xff]  }
 0x5c7   : > { %v2809_v22 = vpop.permute.xlu0 %2808  ;;  %v2813_v52 = vpop.permute.xlu1 %2812 }
 0x5c8   : > { %v2820_v15 = vsel %vm5100_vm15, %v2809_v22, %v2811_v48  ;;  %v2821_v1 = vsel %vm5101_vm1, %v2811_v48, %v2813_v52 }
 0x5c9   : > { %3062 = vmatprep.subr.bf16.mxu0 %v2821_v1 }
 0x5ca   : > { %3063 = vmatpush1.bf16.msra.mxu0 %v2820_v15 }
 0x5cb   : > { %v2819_v17 = vpop.permute.xlu0 %2818  ;;  %v2817_v47 = vpop.permute.xlu1 %2816 }
 0x5cc   : > { %v2823_v50 = vsel %vm5102_vm3, %v2817_v47, %v2819_v17 }
 0x5cd   : > { %3064 = vmatprep.subr.bf16.mxu0 %v2823_v50 }
 0x5cf   : > { %v2841_v58 = vpop.permute.xlu0 %2840  ;;  %v2815_v5 = vpop.permute.xlu1 %2814 }
 0x5d0   : > { %v2822_v39 = vsel %vm5103_vm4, %v2815_v5, %v2817_v47 }
 0x5d1   : > { %3065 = vmatpush1.bf16.msra.mxu0 %v2822_v39 }
 0x5d3   : > { %v2839_v53 = vpop.permute.xlu0 %2838  ;;  %v2843_v54 = vpop.permute.xlu1 %2842 }
 0x5d4   : > { %v2850_v10 = vsel %vm5104_vm10, %v2839_v53, %v2841_v58  ;;  %v2851_v32 = vsel %vm5105_vm7, %v2841_v58, %v2843_v54  ;;  %v5112_v58 = vld [vmem:[#allocation3_spill] sm:$0xff] }
 0x5d5   : > { %3066 = vmatprep.subr.bf16.mxu0 %v2851_v32 }
 0x5d6   : > { %3067 = vmatpush1.bf16.msra.mxu0 %v2850_v10 }
 0x5d7   : > { %v2849_v36 = vpop.permute.xlu0 %2848  ;;  %v2847_v27 = vpop.permute.xlu1 %2846 }
 0x5d8   : > { %v2853_v63 = vsel %vm5106_vm9, %v2847_v27, %v2849_v36 }
 0x5d9   : > { %3068 = vmatprep.subr.bf16.mxu0 %v2853_v63 }
 0x5db   : > { %v2895_v20 = vpop.permute.xlu0 %2894  ;;  %v2845_v41 = vpop.permute.xlu1 %2844 }
 0x5dc   : > { %v2852_v19 = vsel %vm5107_vm11, %v2845_v41, %v2847_v27 }
 0x5dd   : > { %3069 = vmatpush1.bf16.msra.mxu0 %v2852_v19 }
 0x5de   : > { %3070 = vmatprep.subr.bf16.mxu0 %v2875_v55 }
 0x5df   : > { %v2893_v24 = vpop.permute.xlu0 %2892  ;;  %v2897_v21 = vpop.permute.xlu1 %2896 }
 0x5e0   : > { %v2905_v34 = vsel %vm2278_vm2, %v2895_v20, %v2897_v21  ;;  %v2904_v33 = vsel %vm2278_vm2, %v2893_v24, %v2895_v20 }
 0x5e1   : > { %3071 = vmatpush1.bf16.msra.mxu0 %v2874_v29 }
 0x5e2   : > { %3072 = vmatprep.subr.bf16.mxu0 %v2877_v57 }
 0x5e3   : > { %v2903_v28 = vpop.permute.xlu0 %2902  ;;  %v2901_v11 = vpop.permute.xlu1 %2900 }
 0x5e4   : > { %v2907_v38 = vsel %vm2278_vm2, %v2901_v11, %v2903_v28 }
 0x5e5   : > { %3073 = vmatpush1.bf16.msra.mxu0 %v2876_v2 }
 0x5e6   : > { %3074 = vmatprep.subr.bf16.mxu0 %v2905_v34 }
 0x5e7   : > { %v2925_v37 = vpop.permute.xlu0 %2924  ;;  %v2899_v51 = vpop.permute.xlu1 %2898 }
 0x5e8   : > { %v2906_v60 = vsel %vm2278_vm2, %v2899_v51, %v2901_v11 }
 0x5e9   : > { %3075 = vmatpush1.bf16.msra.mxu0 %v2904_v33 }
 0x5ea   : > { %3076 = vmatprep.subr.bf16.mxu0 %v2907_v38 }
 0x5eb   : > { %v2923_v13 = vpop.permute.xlu0 %2922  ;;  %v2927_v49 = vpop.permute.xlu1 %2926 }
 0x5ec   : > { %v2935_v40 = vsel %vm5108_vm13, %v2925_v37, %v2927_v49  ;;  %v2934_v59 = vsel %vm5109_vm5, %v2923_v13, %v2925_v37 }
 0x5ed   : > { %3077 = vmatpush1.bf16.msra.mxu0 %v2906_v60 }
 0x5ee   : > { %3078 = vmatprep.subr.bf16.mxu0 %v2935_v40 }
 0x5ef   : > { %v2933_v16 = vpop.permute.xlu0 %2932  ;;  %v2931_v18 = vpop.permute.xlu1 %2930 }
 0x5f0   : > { %v2937_v42 = vsel %vm5110_vm8, %v2931_v18, %v2933_v16 }
 0x5f1   : > { %3079 = vmatpush1.bf16.msra.mxu0 %v2934_v59 }
 0x5f2   : > { %3080 = vmatprep.subr.bf16.mxu0 %v2937_v42 }
 0x5f3   : > { %v2947_v25 = vpop.permute.xlu0 %2946  ;;  %v2929_v30 = vpop.permute.xlu1 %2928 }
 0x5f4   : > { %v2936_v61 = vsel %vm5111_vm14, %v2929_v30, %v2931_v18  ;;  %v2958_v43 = vsel %vm2305_vm6, %v2947_v25, %v4913_v23 }
 0x5f5   : > { %3081 = vmatpush1.bf16.msra.mxu0 %v2936_v61 }
 0x5f6   : > { %3082 = vmatprep.subr.bf16.mxu0 %v2959_v62 }
 0x5f7   : > { %v2957_v44 = vpop.permute.xlu0 %2956  ;;  %v2955_v4 = vpop.permute.xlu1 %2954 }
 0x5f8   : > { %v2961_v56 = vsel %vm2305_vm6, %v2955_v4, %v2957_v44 }
 0x5f9   : > { %3083 = vmatpush1.bf16.msra.mxu0 %v2958_v43 }
 0x5fa   : > { %3084 = vmatprep.subr.bf16.mxu0 %v2961_v56 }
 0x5fb   : > { %v2979_v14 = vpop.permute.xlu0 %2978  ;;  %v2953_v45 = vpop.permute.xlu1 %2952 }
 0x5fc   : > { %v2960_v8 = vsel %vm2305_vm6, %v2953_v45, %v2955_v4  ;;  %vm2084_vm6 = vcmp.ge.s32.totalorder %v5112_v58, 4 }
 0x5fd   : > { %3085 = vmatpush1.bf16.msra.mxu0 %v2960_v8 }
 0x5ff   : > { %v2977_v3 = vpop.permute.xlu0 %2976  ;;  %v2981_v0 = vpop.permute.xlu1 %2980 }
 0x600   : > { %v2988_v6 = vsel %vm2317_vm12, %v2977_v3, %v2979_v14  ;;  %3087 = vmatmul.mubr.bf16.vlgmr.msra.gmra.mrb[8].mxu0 %v3275_v35  ;;  %v2989_v7 = vsel %vm2317_vm12, %v2979_v14, %v2981_v0 }
 0x601   : > { %3095 = vmatprep.subr.bf16.mxu0 %v2989_v7  ;;  %3127 = vmatprep.mubr.bf16.mxu0 %v5061_v26 }
 0x602   : > { %3096 = vmatpush1.bf16.msra.mxu0 %v2988_v6 }
 0x603   : > { %v2987_v9 = vpop.permute.xlu0 %2986  ;;  %v2985_v23 = vpop.permute.xlu1 %2984 }
 0x604   : > { %v2991_v46 = vsel %vm2317_vm12, %v2985_v23, %v2987_v9 }
 0x605   : > { %3097 = vmatprep.subr.bf16.mxu0 %v2991_v46 }
 0x607   : > { %v2983_v48 = vpop.permute.xlu1 %2982 }
 0x608   : > { %v2990_v12 = vsel %vm2317_vm12, %v2983_v48, %v2985_v23 }
 0x609   : > { %3098 = vmatpush1.bf16.msra.mxu0 %v2990_v12 }
 0x60c   : > { %3278 = vmatmul.mubr.msk.bf16.vlgmr.msra.gmra.mrb[8].mxu0 %vm773_vm0, %v3667_v31 }
 0x614   : > { %v3039_v22 = vpop.permute.xlu0 %3038 }
 0x6df   : > { %v3129_v52 = vpop.f32.mrb[8].mxu0 }
 0x6e0   : > { %v3623_v15 = vadd.f32 %v3129_v52, %v3039_v22  ;;  %v3131_v26 = vpop.f32.mrb[9].mxu0 }
 0x6e1   : > { %v3624_v1 = vadd.f32 %v3131_v26, %v3039_v22  ;;  %v3133_v17 = vpop.f32.mrb[10].mxu0 }
 0x6e2   : > { %v3136_v47 = vadd.f32 1.0, %v3623_v15  ;;  %v3134_v50 = vpop.f32.mrb[11].mxu0 }
 0x6e3   : > { %v3137_v5 = vadd.f32 1.0, %v3624_v1 }
 0x6e4   : > { %v3138_v39 = vmul.f32 0.5, %v3136_v47 }
 0x6e5   : > { %v3139_v53 = vmul.f32 0.5, %v3137_v5 }
 0x6e6   : > { %v3142_v54 = vsel %vm2084_vm6, %v3138_v39, %v3623_v15 }
 0x6e7   : > { %3144 = vst [vmem:[%s737_s0] sm:$0xff] %v3142_v54  ;;  %v3143_v10 = vsel %vm2084_vm6, %v3139_v53, %v3624_v1 }
 0x6e8   : > { %3145 = vst [vmem:[%s737_s0 + $0x8] sm:$0xff] %v3143_v10 }
 0x6e9 PF: > { %s34_s5 = sadd.s32 1, %s3750_s5  }
 0x6ea   : > { %p31_p4 = scmp.ge.s32.totalorder %s34_s5, 4  }
 0x6ec   :  { %33 = sbr.rel (!%p31_p4) target bundleno = 10 (0xa), region = 146 }

</bundles_post_ra>
